<compile_context>
chip_gen: v7x
topology: tpu7x:2x2x1
jax: 0.10.0
libtpu: 0.0.40
codegen_flags: <defaults>
</compile_context>

<pallas_src>
import jax
import jax.numpy as jnp
import numpy as np
from jax import lax
from jax.experimental import pallas as pl
from jax.experimental.pallas import tpu as pltpu

N_HIDDEN = 30     # fixed in the module (self.n_hidden = 30)
N_HIDDEN_PAD = 32 # padded hidden width used inside the kernel (4*32 = 128 lanes)
N_LAYERS = 2      # fixed in the module (self.n_layers = 2)
N_OUT = 2         # Linear(..., 2)
N_OUT_PAD = 128   # lane-dense padded output width (unmasked stores)


def _tensorcores_per_chip():
    """Best-effort TensorCores-per-chip query (v7x/v4 -> 2, v5e/v6e -> 1)."""
    try:
        kind = jax.devices()[0].device_kind.lower()
        if "v7" in kind or "v4" in kind:
            return 2
    except Exception:
        pass
    return 1


# ---------------------------------------------------------------------------
# Pallas kernel: whole forward pass (2-layer LSTM over time + final linear)
# ---------------------------------------------------------------------------
def _mv_lstm_kernel(x_ref,      # (T*Bb, F)   time-major 2-D input slab (row = t*Bb + b)
                    wih0_ref,   # (F, 4Hp)    weight_ih_l0.T, gate-padded
                    whh0_ref,   # (Hp, 4Hp)   weight_hh_l0.T, row+gate padded
                    b0_ref,     # (1, 4Hp)    bias_ih_l0 + bias_hh_l0, gate-padded
                    wih1_ref,   # (Hp, 4Hp)   weight_ih_l1.T, row+gate padded
                    whh1_ref,   # (Hp, 4Hp)   weight_hh_l1.T, row+gate padded
                    b1_ref,     # (1, 4Hp)
                    wlin_ref,   # (T, Hp, NP) l_linear.weight.T reshaped + padded
                    blin_ref,   # (1, NP)
                    out_ref,    # (Bb, NP)
                    xg0_ref):   # VMEM scratch (T*Bb, 4Hp): precomputed layer-0 input gates
    Hp = whh0_ref.shape[0]
    G = 4 * Hp
    T = wlin_ref.shape[0]
    Bb, NP = out_ref.shape

    # ---- layer-0 input projection (+ bias), hoisted off the serial chain ----
    xg0_ref[...] = (
        jnp.dot(x_ref[...].astype(jnp.float32), wih0_ref[...],
                preferred_element_type=jnp.float32)
        + b0_ref[...])

    whh0 = whh0_ref[...]
    wih1 = wih1_ref[...]
    whh1 = whh1_ref[...]
    b1 = jnp.broadcast_to(b1_ref[...], (Bb, G))              # hoisted broadcast
    acc0 = jnp.broadcast_to(blin_ref[...], (Bb, NP))         # linear bias folded in

    # Single-tanh gate activations (gate order i, f, g, o):
    #   sigmoid(x) = 0.5 * tanh(0.5 * x) + 0.5
    # Per-lane pre-scale is 0.5 on the three sigmoid gates and 1.0 on the tanh
    # gate, so ONE full-width tanh produces all four activations; the affine
    # fix-up is pure VALU.  Constants are built & broadcast once (hoisted).
    lane = lax.broadcasted_iota(jnp.int32, (Bb, G), 1)
    is_g_gate = (lane >= 2 * Hp) & (lane < 3 * Hp)
    pre_b = jnp.where(is_g_gate, jnp.float32(1.0), jnp.float32(0.5))
    shift_b = jnp.where(is_g_gate, jnp.float32(0.0), jnp.float32(0.5))

    def gates_to_hc(gates, c):
        t = jnp.tanh(gates * pre_b)          # 1 EUP push for all 4 gates
        act = t * pre_b + shift_b            # VALU fix-up (free slots)
        i_g = act[:, 0 * Hp:1 * Hp]
        f_g = act[:, 1 * Hp:2 * Hp]
        g_g = act[:, 2 * Hp:3 * Hp]
        o_g = act[:, 3 * Hp:4 * Hp]
        # Padded lanes: gates==0 -> i/f/o=0.5, g=0, and c starts at 0, so
        # padded lanes of c and h stay exactly 0 through the recurrence.
        c_new = f_g * c + i_g * g_g
        h_new = o_g * jnp.tanh(c_new)
        return h_new, c_new

    def step(t, carry):
        h0, c0, h1, c1, acc = carry
        row = pl.multiple_of(t * Bb, Bb)     # Bb is a multiple of 8 (aligned slice)
        # layer 0: only the recurrent matmul is left on the critical path
        g0 = xg0_ref[pl.ds(row, Bb), :] + jnp.dot(
            h0, whh0, preferred_element_type=jnp.float32)
        h0, c0 = gates_to_hc(g0, c0)
        # layer 1
        g1 = (jnp.dot(h0, wih1, preferred_element_type=jnp.float32)
              + jnp.dot(h1, whh1, preferred_element_type=jnp.float32)
              + b1)
        h1, c1 = gates_to_hc(g1, c1)
        # flattened-linear partial product for this timestep
        acc = acc + jnp.dot(h1, wlin_ref[t], preferred_element_type=jnp.float32)
        return h0, c0, h1, c1, acc

    zeros_h = jnp.zeros((Bb, Hp), jnp.float32)                # init_hidden -> zeros
    _, _, _, _, acc = lax.fori_loop(
        0, T, step, (zeros_h, zeros_h, zeros_h, zeros_h, acc0), unroll=True)

    out_ref[...] = acc.astype(out_ref.dtype)


# ---------------------------------------------------------------------------
# Wrapper: parameter padding/plumbing + pallas_call
# ---------------------------------------------------------------------------
def mv_lstm_forward(x, params, *, b_blk=None, num_tensorcores=None):
    """x: (B, T, F) float32 (PyTorch batch_first layout). Returns (B, 2)."""
    B, T, F = x.shape
    H = N_HIDDEN
    Hp = N_HIDDEN_PAD
    NP = N_OUT_PAD

    # --- generation-aware grid blocking -----------------------------------
    # Single-TC chips (v5e/v6e): 1 block (grid is a serial loop; >1 block
    # re-runs the whole recurrence).  Dual-TC chips (v7x/v4): exactly 2 blocks,
    # one per TensorCore, sharded via dimension_semantics=("parallel",).
    if num_tensorcores is None:
        num_tensorcores = _tensorcores_per_chip()
    want_blocks = 2 if num_tensorcores >= 2 else 1

    # Pad batch so every block is a multiple of 8 rows (aligned (8,128) tiles).
    row_mult = 8 * want_blocks
    Bp = ((B + row_mult - 1) // row_mult) * row_mult

    if b_blk is None:
        b_blk = Bp // want_blocks
        # VMEM guard (irrelevant at demo sizes; matters for very large T*B*F,
        # especially on v7x with 64 MiB physical / 32 MiB default scoped VMEM).
        def _block_bytes(blk):
            return 4 * (T * blk * 4 * Hp      # xg0 scratch
                        + 2 * T * blk * F     # double-buffered x slab
                        + 2 * blk * NP)       # double-buffered out block
        vmem_cap = 24 << 20
        try:
            vmem_cap = min(vmem_cap,
                           pltpu.get_tpu_info().vmem_capacity_bytes // 4)
        except Exception:
            pass
        while _block_bytes(b_blk) > vmem_cap and b_blk % 16 == 0:
            b_blk //= 2
    assert Bp % b_blk == 0 and b_blk % 8 == 0, (Bp, b_blk)
    n_blocks = Bp // b_blk

    # --- pad helpers: gate blocks of width H -> Hp (zeros), hidden rows -> Hp ---
    # NOTE: the kernel's "padded hidden lanes stay 0" invariant requires these
    # pads to be exactly zero AND the initial hidden/cell state to be zero.
    def pad_gate_cols(w):                       # (..., 4H) -> (..., 4Hp)
        parts = jnp.split(w, 4, axis=-1)
        pad = [(0, 0)] * (w.ndim - 1) + [(0, Hp - H)]
        return jnp.concatenate([jnp.pad(p, pad) for p in parts], axis=-1)

    def pad_rows(w):                            # (H, C) -> (Hp, C)
        return jnp.pad(w, ((0, Hp - w.shape[0]), (0, 0)))

    wih0_t = pad_gate_cols(params["w_ih0"].T)                              # (F, 4Hp)
    whh0_t = pad_rows(pad_gate_cols(params["w_hh0"].T))                    # (Hp, 4Hp)
    b0 = pad_gate_cols((params["b_ih0"] + params["b_hh0"])[None, :])       # (1, 4Hp)
    wih1_t = pad_rows(pad_gate_cols(params["w_ih1"].T))                    # (Hp, 4Hp)
    whh1_t = pad_rows(pad_gate_cols(params["w_hh1"].T))                    # (Hp, 4Hp)
    b1 = pad_gate_cols((params["b_ih1"] + params["b_hh1"])[None, :])       # (1, 4Hp)

    wlin = params["w_lin"].T.reshape(T, H, N_OUT)                          # (T, H, 2)
    wlin = jnp.pad(wlin, ((0, 0), (0, Hp - H), (0, NP - N_OUT)))           # (T, Hp, NP)
    blin = jnp.pad(params["b_lin"][None, :], ((0, 0), (0, NP - N_OUT)))    # (1, NP)

    # x: (B, T, F) -> pad batch -> per-block 2-D time-major slabs
    # (row inside block = t*b_blk + b)
    x_p = jnp.pad(x, ((0, Bp - B), (0, 0), (0, 0)))
    x_blk = (jnp.transpose(x_p, (1, 0, 2))               # (T, Bp, F)
             .reshape(T, n_blocks, b_blk, F)
             .transpose(1, 0, 2, 3)                      # (n_blocks, T, b_blk, F)
             .reshape(n_blocks, T * b_blk, F))

    def const_spec(shape):
        zeros = (0,) * len(shape)
        return pl.BlockSpec(shape, lambda b, _z=zeros: _z)

    grid = (n_blocks,)
    in_specs = [
        pl.BlockSpec((None, T * b_blk, F), lambda b: (b, 0, 0)),  # x slab per block
        const_spec((F, 4 * Hp)),
        const_spec((Hp, 4 * Hp)),
        const_spec((1, 4 * Hp)),
        const_spec((Hp, 4 * Hp)),
        const_spec((Hp, 4 * Hp)),
        const_spec((1, 4 * Hp)),
        const_spec((T, Hp, NP)),
        const_spec((1, NP)),
    ]
    out_specs = pl.BlockSpec((b_blk, NP), lambda b: (b, 0))

    out_padded = pl.pallas_call(
        _mv_lstm_kernel,
        out_shape=jax.ShapeDtypeStruct((Bp, NP), jnp.float32),
        grid=grid,
        in_specs=in_specs,
        out_specs=out_specs,
        scratch_shapes=[pltpu.VMEM((T * b_blk, 4 * Hp), jnp.float32)],
        compiler_params=pltpu.CompilerParams(dimension_semantics=("parallel",)),
    )(x_blk, wih0_t, whh0_t, b0, wih1_t, whh1_t, b1, wlin, blin)

    return out_padded[:B, :N_OUT]


# ---------------------------------------------------------------------------
# Deterministic parameter init (torch.nn.LSTM / Linear shapes, uniform(-k, k))
# ---------------------------------------------------------------------------
def init_params(key, n_features, seq_len):
    H = N_HIDDEN
    k_lstm = 1.0 / np.sqrt(H)
    k_lin = 1.0 / np.sqrt(H * seq_len)
    keys = jax.random.split(key, 10)
    u = lambda k, shape, lim: jax.random.uniform(
        k, shape, jnp.float32, minval=-lim, maxval=lim)
    return {
        "w_ih0": u(keys[0], (4 * H, n_features), k_lstm),
        "w_hh0": u(keys[1], (4 * H, H), k_lstm),
        "b_ih0": u(keys[2], (4 * H,), k_lstm),
        "b_hh0": u(keys[3], (4 * H,), k_lstm),
        "w_ih1": u(keys[4], (4 * H, H), k_lstm),
        "w_hh1": u(keys[5], (4 * H, H), k_lstm),
        "b_ih1": u(keys[6], (4 * H,), k_lstm),
        "b_hh1": u(keys[7], (4 * H,), k_lstm),
        "w_lin": u(keys[8], (N_OUT, H * seq_len), k_lin),
        "b_lin": u(keys[9], (N_OUT,), k_lin),
    }


# ---------------------------------------------------------------------------
# Pure-JAX reference (mirrors torch.nn.LSTM semantics) for correctness check
# ---------------------------------------------------------------------------
def mv_lstm_reference(x, p):
    B, T, F = x.shape
    H = N_HIDDEN

    def run_layer(inp, wih, whh, bih, bhh):
        def step(carry, x_t):
            h, c = carry
            gates = x_t @ wih.T + bih + h @ whh.T + bhh
            i_g, f_g, g_g, o_g = jnp.split(gates, 4, axis=-1)
            i_g = jax.nn.sigmoid(i_g)
            f_g = jax.nn.sigmoid(f_g)
            g_g = jnp.tanh(g_g)
            o_g = jax.nn.sigmoid(o_g)
            c = f_g * c + i_g * g_g
            h = o_g * jnp.tanh(c)
            return (h, c), h

        init = (jnp.zeros((B, H), jnp.float32), jnp.zeros((B, H), jnp.float32))
        _, hs = lax.scan(step, init, jnp.swapaxes(inp, 0, 1))
        return jnp.swapaxes(hs, 0, 1)                        # (B, T, H)

    out0 = run_layer(x, p["w_ih0"], p["w_hh0"], p["b_ih0"], p["b_hh0"])
    out1 = run_layer(out0, p["w_ih1"], p["w_hh1"], p["b_ih1"], p["b_hh1"])
    flat = out1.reshape(B, T * H)                            # .view(batch, -1)
    return flat @ p["w_lin"].T + p["b_lin"]


if __name__ == "__main__":
    # Small shapes consistent with the module's forward (batch, seq, features).
    B, T, F = 16, 8, 16

    key = jax.random.PRNGKey(0)
    k_x, k_p = jax.random.split(key)
    x = jax.random.normal(k_x, (B, T, F), dtype=jnp.float32)
    params = init_params(k_p, n_features=F, seq_len=T)

    out = mv_lstm_forward(x, params)
    out = jax.block_until_ready(out)

    ref = jax.block_until_ready(mv_lstm_reference(x, params))
    assert out.shape == (B, N_OUT), out.shape
    # sigmoid(x) == 0.5*tanh(0.5x)+0.5 is exact in real arithmetic but can
    # differ from lax.logistic by a few ULP -> slight tolerance headroom.
    np.testing.assert_allclose(np.asarray(out), np.asarray(ref),
                               rtol=2e-5, atol=2e-5)
    print("KERNEL_OK")
</pallas_src>

<mosaic_0001>
module attributes {stable_mosaic.version = 11 : i64} {
  func.func @_mv_lstm_kernel(%arg0: i32, %arg1: memref<1x128x16xf32, #tpu.memory_space<vmem>>, %arg2: memref<16x128xf32, #tpu.memory_space<vmem>>, %arg3: memref<32x128xf32, #tpu.memory_space<vmem>>, %arg4: memref<1x128xf32, #tpu.memory_space<vmem>>, %arg5: memref<32x128xf32, #tpu.memory_space<vmem>>, %arg6: memref<32x128xf32, #tpu.memory_space<vmem>>, %arg7: memref<1x128xf32, #tpu.memory_space<vmem>>, %arg8: memref<8x32x128xf32, #tpu.memory_space<vmem>>, %arg9: memref<1x128xf32, #tpu.memory_space<vmem>>, %arg10: memref<16x128xf32, #tpu.memory_space<vmem>>, %arg11: memref<128x128xf32, #tpu.memory_space<vmem>>) attributes {dimension_semantics = [#tpu.dimension_semantics<parallel>], iteration_bounds = array<i64: 1>, scalar_prefetch = 0 : i64, scratch_operands = 1 : i64, tpu.core_type = #tpu.core_type<tc>, window_params = [{transform_indices = @transform_0, window_bounds = array<i64: 1, 128, 16>}, {pipeline_mode = #tpu.pipeline_mode<synchronous>, transform_indices = @transform_1, window_bounds = array<i64: 16, 128>}, {pipeline_mode = #tpu.pipeline_mode<synchronous>, transform_indices = @transform_2, window_bounds = array<i64: 32, 128>}, {pipeline_mode = #tpu.pipeline_mode<synchronous>, transform_indices = @transform_3, window_bounds = array<i64: 1, 128>}, {pipeline_mode = #tpu.pipeline_mode<synchronous>, transform_indices = @transform_4, window_bounds = array<i64: 32, 128>}, {pipeline_mode = #tpu.pipeline_mode<synchronous>, transform_indices = @transform_5, window_bounds = array<i64: 32, 128>}, {pipeline_mode = #tpu.pipeline_mode<synchronous>, transform_indices = @transform_6, window_bounds = array<i64: 1, 128>}, {pipeline_mode = #tpu.pipeline_mode<synchronous>, transform_indices = @transform_7, window_bounds = array<i64: 8, 32, 128>}, {pipeline_mode = #tpu.pipeline_mode<synchronous>, transform_indices = @transform_8, window_bounds = array<i64: 1, 128>}, {transform_indices = @transform_9, window_bounds = array<i64: 16, 128>}]} {
    %c0 = arith.constant 0 : index
    %c0_0 = arith.constant 0 : index
    %c0_1 = arith.constant 0 : index
    %0 = vector.load %arg1[%c0, %c0_0, %c0_1] : memref<1x128x16xf32, #tpu.memory_space<vmem>>, vector<1x128x16xf32>
    %1 = vector.shape_cast %0 : vector<1x128x16xf32> to vector<128x16xf32>
    %c0_2 = arith.constant 0 : index
    %c0_3 = arith.constant 0 : index
    %2 = vector.load %arg2[%c0_2, %c0_3] : memref<16x128xf32, #tpu.memory_space<vmem>>, vector<16x128xf32>
    %cst = arith.constant dense<0.000000e+00> : vector<128x128xf32>
    %3 = tpu.matmul %1, %2, %cst {dimension_numbers = #tpu.dot_dimension_numbers<[1], [0], [0], [1], [0, 0, 1, 1], [], []>} : vector<128x16xf32>, vector<16x128xf32>, vector<128x128xf32> -> vector<128x128xf32>
    %c0_4 = arith.constant 0 : index
    %c0_5 = arith.constant 0 : index
    %4 = vector.load %arg4[%c0_4, %c0_5] : memref<1x128xf32, #tpu.memory_space<vmem>>, vector<1x128xf32>
    %5 = vector.broadcast %4 : vector<1x128xf32> to vector<128x128xf32>
    %6 = arith.addf %3, %5 : vector<128x128xf32>
    %c0_6 = arith.constant 0 : index
    %c0_7 = arith.constant 0 : index
    %7 = vector.load %arg11[%c0_6, %c0_7] : memref<128x128xf32, #tpu.memory_space<vmem>>, vector<128x128xf32>
    tpu.vector_store %arg11[%c0_6, %c0_7], %6 {strides = array<i32>} : memref<128x128xf32, #tpu.memory_space<vmem>>, vector<128x128xf32>,
    %c0_8 = arith.constant 0 : index
    %c0_9 = arith.constant 0 : index
    %8 = vector.load %arg3[%c0_8, %c0_9] : memref<32x128xf32, #tpu.memory_space<vmem>>, vector<32x128xf32>
    %c0_10 = arith.constant 0 : index
    %c0_11 = arith.constant 0 : index
    %9 = vector.load %arg5[%c0_10, %c0_11] : memref<32x128xf32, #tpu.memory_space<vmem>>, vector<32x128xf32>
    %c0_12 = arith.constant 0 : index
    %c0_13 = arith.constant 0 : index
    %10 = vector.load %arg6[%c0_12, %c0_13] : memref<32x128xf32, #tpu.memory_space<vmem>>, vector<32x128xf32>
    %c0_14 = arith.constant 0 : index
    %c0_15 = arith.constant 0 : index
    %11 = vector.load %arg7[%c0_14, %c0_15] : memref<1x128xf32, #tpu.memory_space<vmem>>, vector<1x128xf32>
    %12 = vector.shape_cast %11 : vector<1x128xf32> to vector<1x128xf32>
    %13 = vector.broadcast %12 : vector<1x128xf32> to vector<16x128xf32>
    %c0_16 = arith.constant 0 : index
    %c0_17 = arith.constant 0 : index
    %14 = vector.load %arg9[%c0_16, %c0_17] : memref<1x128xf32, #tpu.memory_space<vmem>>, vector<1x128xf32>
    %15 = vector.shape_cast %14 : vector<1x128xf32> to vector<1x128xf32>
    %16 = vector.broadcast %15 : vector<1x128xf32> to vector<16x128xf32>
    %17 = tpu.iota {dimensions = array<i32: 1>} : vector<16x128xi32>
    %c64_i32 = arith.constant 64 : i32
    %18 = vector.broadcast %c64_i32 : i32 to vector<16x128xi32>
    %19 = arith.cmpi sge, %17, %18 : vector<16x128xi32>
    %c96_i32 = arith.constant 96 : i32
    %20 = vector.broadcast %c96_i32 : i32 to vector<16x128xi32>
    %21 = arith.cmpi slt, %17, %20 : vector<16x128xi32>
    %22 = arith.andi %19, %21 : vector<16x128xi1>
    %cst_18 = arith.constant 1.000000e+00 : f32
    %cst_19 = arith.constant 5.000000e-01 : f32
    %23 = vector.broadcast %cst_18 : f32 to vector<16x128xf32>
    %24 = vector.broadcast %cst_19 : f32 to vector<16x128xf32>
    %25 = arith.select %22, %23, %24 : vector<16x128xi1>, vector<16x128xf32>
    %cst_20 = arith.constant 0.000000e+00 : f32
    %cst_21 = arith.constant 5.000000e-01 : f32
    %26 = vector.broadcast %cst_20 : f32 to vector<16x128xf32>
    %27 = vector.broadcast %cst_21 : f32 to vector<16x128xf32>
    %28 = arith.select %22, %26, %27 : vector<16x128xi1>, vector<16x128xf32>
    %cst_22 = arith.constant 0.000000e+00 : f32
    %29 = vector.broadcast %cst_22 : f32 to vector<16x32xf32>
    %c0_i32 = arith.constant 0 : i32
    %c16_i32 = arith.constant 16 : i32
    %30 = arith.muli %c0_i32, %c16_i32 : i32
    %31 = tpu.assume_multiple %30, 16 : i32
    %32 = arith.index_cast %31 : i32 to index
    %c0_23 = arith.constant 0 : index
    %33 = vector.load %arg11[%32, %c0_23] : memref<128x128xf32, #tpu.memory_space<vmem>>, vector<16x128xf32>
    %cst_24 = arith.constant dense<0.000000e+00> : vector<16x128xf32>
    %34 = tpu.matmul %29, %8, %cst_24 {dimension_numbers = #tpu.dot_dimension_numbers<[1], [0], [0], [1], [0, 0, 1, 1], [], []>} : vector<16x32xf32>, vector<32x128xf32>, vector<16x128xf32> -> vector<16x128xf32>
    %35 = arith.addf %33, %34 : vector<16x128xf32>
    %36 = arith.mulf %35, %25 : vector<16x128xf32>
    %37 = math.tanh %36 : vector<16x128xf32>
    %38 = arith.mulf %37, %25 : vector<16x128xf32>
    %39 = arith.addf %38, %28 : vector<16x128xf32>
    %40 = vector.extract_strided_slice %39 {offsets = [0, 0], sizes = [16, 32], strides = [1, 1]} : vector<16x128xf32> to vector<16x32xf32>
    %41 = vector.extract_strided_slice %39 {offsets = [0, 32], sizes = [16, 32], strides = [1, 1]} : vector<16x128xf32> to vector<16x32xf32>
    %42 = vector.extract_strided_slice %39 {offsets = [0, 64], sizes = [16, 32], strides = [1, 1]} : vector<16x128xf32> to vector<16x32xf32>
    %43 = vector.extract_strided_slice %39 {offsets = [0, 96], sizes = [16, 32], strides = [1, 1]} : vector<16x128xf32> to vector<16x32xf32>
    %44 = arith.mulf %41, %29 : vector<16x32xf32>
    %45 = arith.mulf %40, %42 : vector<16x32xf32>
    %46 = arith.addf %44, %45 : vector<16x32xf32>
    %47 = math.tanh %46 : vector<16x32xf32>
    %48 = arith.mulf %43, %47 : vector<16x32xf32>
    %cst_25 = arith.constant dense<0.000000e+00> : vector<16x128xf32>
    %49 = tpu.matmul %48, %9, %cst_25 {dimension_numbers = #tpu.dot_dimension_numbers<[1], [0], [0], [1], [0, 0, 1, 1], [], []>} : vector<16x32xf32>, vector<32x128xf32>, vector<16x128xf32> -> vector<16x128xf32>
    %cst_26 = arith.constant dense<0.000000e+00> : vector<16x128xf32>
    %50 = tpu.matmul %29, %10, %cst_26 {dimension_numbers = #tpu.dot_dimension_numbers<[1], [0], [0], [1], [0, 0, 1, 1], [], []>} : vector<16x32xf32>, vector<32x128xf32>, vector<16x128xf32> -> vector<16x128xf32>
    %51 = arith.addf %49, %50 : vector<16x128xf32>
    %52 = arith.addf %51, %13 : vector<16x128xf32>
    %53 = arith.mulf %52, %25 : vector<16x128xf32>
    %54 = math.tanh %53 : vector<16x128xf32>
    %55 = arith.mulf %54, %25 : vector<16x128xf32>
    %56 = arith.addf %55, %28 : vector<16x128xf32>
    %57 = vector.extract_strided_slice %56 {offsets = [0, 0], sizes = [16, 32], strides = [1, 1]} : vector<16x128xf32> to vector<16x32xf32>
    %58 = vector.extract_strided_slice %56 {offsets = [0, 32], sizes = [16, 32], strides = [1, 1]} : vector<16x128xf32> to vector<16x32xf32>
    %59 = vector.extract_strided_slice %56 {offsets = [0, 64], sizes = [16, 32], strides = [1, 1]} : vector<16x128xf32> to vector<16x32xf32>
    %60 = vector.extract_strided_slice %56 {offsets = [0, 96], sizes = [16, 32], strides = [1, 1]} : vector<16x128xf32> to vector<16x32xf32>
    %61 = arith.mulf %58, %29 : vector<16x32xf32>
    %62 = arith.mulf %57, %59 : vector<16x32xf32>
    %63 = arith.addf %61, %62 : vector<16x32xf32>
    %64 = math.tanh %63 : vector<16x32xf32>
    %65 = arith.mulf %60, %64 : vector<16x32xf32>
    %66 = arith.index_cast %c0_i32 : i32 to index
    %c0_27 = arith.constant 0 : index
    %c0_28 = arith.constant 0 : index
    %67 = vector.load %arg8[%66, %c0_27, %c0_28] : memref<8x32x128xf32, #tpu.memory_space<vmem>>, vector<1x32x128xf32>
    %68 = vector.shape_cast %67 : vector<1x32x128xf32> to vector<32x128xf32>
    %cst_29 = arith.constant dense<0.000000e+00> : vector<16x128xf32>
    %69 = tpu.matmul %65, %68, %cst_29 {dimension_numbers = #tpu.dot_dimension_numbers<[1], [0], [0], [1], [0, 0, 1, 1], [], []>} : vector<16x32xf32>, vector<32x128xf32>, vector<16x128xf32> -> vector<16x128xf32>
    %70 = arith.addf %16, %69 : vector<16x128xf32>
    %c1_i32 = arith.constant 1 : i32
    %c16_i32_30 = arith.constant 16 : i32
    %71 = arith.muli %c1_i32, %c16_i32_30 : i32
    %72 = tpu.assume_multiple %71, 16 : i32
    %73 = arith.index_cast %72 : i32 to index
    %c0_31 = arith.constant 0 : index
    %74 = vector.load %arg11[%73, %c0_31] : memref<128x128xf32, #tpu.memory_space<vmem>>, vector<16x128xf32>
    %cst_32 = arith.constant dense<0.000000e+00> : vector<16x128xf32>
    %75 = tpu.matmul %48, %8, %cst_32 {dimension_numbers = #tpu.dot_dimension_numbers<[1], [0], [0], [1], [0, 0, 1, 1], [], []>} : vector<16x32xf32>, vector<32x128xf32>, vector<16x128xf32> -> vector<16x128xf32>
    %76 = arith.addf %74, %75 : vector<16x128xf32>
    %77 = arith.mulf %76, %25 : vector<16x128xf32>
    %78 = math.tanh %77 : vector<16x128xf32>
    %79 = arith.mulf %78, %25 : vector<16x128xf32>
    %80 = arith.addf %79, %28 : vector<16x128xf32>
    %81 = vector.extract_strided_slice %80 {offsets = [0, 0], sizes = [16, 32], strides = [1, 1]} : vector<16x128xf32> to vector<16x32xf32>
    %82 = vector.extract_strided_slice %80 {offsets = [0, 32], sizes = [16, 32], strides = [1, 1]} : vector<16x128xf32> to vector<16x32xf32>
    %83 = vector.extract_strided_slice %80 {offsets = [0, 64], sizes = [16, 32], strides = [1, 1]} : vector<16x128xf32> to vector<16x32xf32>
    %84 = vector.extract_strided_slice %80 {offsets = [0, 96], sizes = [16, 32], strides = [1, 1]} : vector<16x128xf32> to vector<16x32xf32>
    %85 = arith.mulf %82, %46 : vector<16x32xf32>
    %86 = arith.mulf %81, %83 : vector<16x32xf32>
    %87 = arith.addf %85, %86 : vector<16x32xf32>
    %88 = math.tanh %87 : vector<16x32xf32>
    %89 = arith.mulf %84, %88 : vector<16x32xf32>
    %cst_33 = arith.constant dense<0.000000e+00> : vector<16x128xf32>
    %90 = tpu.matmul %89, %9, %cst_33 {dimension_numbers = #tpu.dot_dimension_numbers<[1], [0], [0], [1], [0, 0, 1, 1], [], []>} : vector<16x32xf32>, vector<32x128xf32>, vector<16x128xf32> -> vector<16x128xf32>
    %cst_34 = arith.constant dense<0.000000e+00> : vector<16x128xf32>
    %91 = tpu.matmul %65, %10, %cst_34 {dimension_numbers = #tpu.dot_dimension_numbers<[1], [0], [0], [1], [0, 0, 1, 1], [], []>} : vector<16x32xf32>, vector<32x128xf32>, vector<16x128xf32> -> vector<16x128xf32>
    %92 = arith.addf %90, %91 : vector<16x128xf32>
    %93 = arith.addf %92, %13 : vector<16x128xf32>
    %94 = arith.mulf %93, %25 : vector<16x128xf32>
    %95 = math.tanh %94 : vector<16x128xf32>
    %96 = arith.mulf %95, %25 : vector<16x128xf32>
    %97 = arith.addf %96, %28 : vector<16x128xf32>
    %98 = vector.extract_strided_slice %97 {offsets = [0, 0], sizes = [16, 32], strides = [1, 1]} : vector<16x128xf32> to vector<16x32xf32>
    %99 = vector.extract_strided_slice %97 {offsets = [0, 32], sizes = [16, 32], strides = [1, 1]} : vector<16x128xf32> to vector<16x32xf32>
    %100 = vector.extract_strided_slice %97 {offsets = [0, 64], sizes = [16, 32], strides = [1, 1]} : vector<16x128xf32> to vector<16x32xf32>
    %101 = vector.extract_strided_slice %97 {offsets = [0, 96], sizes = [16, 32], strides = [1, 1]} : vector<16x128xf32> to vector<16x32xf32>
    %102 = arith.mulf %99, %63 : vector<16x32xf32>
    %103 = arith.mulf %98, %100 : vector<16x32xf32>
    %104 = arith.addf %102, %103 : vector<16x32xf32>
    %105 = math.tanh %104 : vector<16x32xf32>
    %106 = arith.mulf %101, %105 : vector<16x32xf32>
    %107 = arith.index_cast %c1_i32 : i32 to index
    %c0_35 = arith.constant 0 : index
    %c0_36 = arith.constant 0 : index
    %108 = vector.load %arg8[%107, %c0_35, %c0_36] : memref<8x32x128xf32, #tpu.memory_space<vmem>>, vector<1x32x128xf32>
    %109 = vector.shape_cast %108 : vector<1x32x128xf32> to vector<32x128xf32>
    %cst_37 = arith.constant dense<0.000000e+00> : vector<16x128xf32>
    %110 = tpu.matmul %106, %109, %cst_37 {dimension_numbers = #tpu.dot_dimension_numbers<[1], [0], [0], [1], [0, 0, 1, 1], [], []>} : vector<16x32xf32>, vector<32x128xf32>, vector<16x128xf32> -> vector<16x128xf32>
    %111 = arith.addf %70, %110 : vector<16x128xf32>
    %c2_i32 = arith.constant 2 : i32
    %c16_i32_38 = arith.constant 16 : i32
    %112 = arith.muli %c2_i32, %c16_i32_38 : i32
    %113 = tpu.assume_multiple %112, 16 : i32
    %114 = arith.index_cast %113 : i32 to index
    %c0_39 = arith.constant 0 : index
    %115 = vector.load %arg11[%114, %c0_39] : memref<128x128xf32, #tpu.memory_space<vmem>>, vector<16x128xf32>
    %cst_40 = arith.constant dense<0.000000e+00> : vector<16x128xf32>
    %116 = tpu.matmul %89, %8, %cst_40 {dimension_numbers = #tpu.dot_dimension_numbers<[1], [0], [0], [1], [0, 0, 1, 1], [], []>} : vector<16x32xf32>, vector<32x128xf32>, vector<16x128xf32> -> vector<16x128xf32>
    %117 = arith.addf %115, %116 : vector<16x128xf32>
    %118 = arith.mulf %117, %25 : vector<16x128xf32>
    %119 = math.tanh %118 : vector<16x128xf32>
    %120 = arith.mulf %119, %25 : vector<16x128xf32>
    %121 = arith.addf %120, %28 : vector<16x128xf32>
    %122 = vector.extract_strided_slice %121 {offsets = [0, 0], sizes = [16, 32], strides = [1, 1]} : vector<16x128xf32> to vector<16x32xf32>
    %123 = vector.extract_strided_slice %121 {offsets = [0, 32], sizes = [16, 32], strides = [1, 1]} : vector<16x128xf32> to vector<16x32xf32>
    %124 = vector.extract_strided_slice %121 {offsets = [0, 64], sizes = [16, 32], strides = [1, 1]} : vector<16x128xf32> to vector<16x32xf32>
    %125 = vector.extract_strided_slice %121 {offsets = [0, 96], sizes = [16, 32], strides = [1, 1]} : vector<16x128xf32> to vector<16x32xf32>
    %126 = arith.mulf %123, %87 : vector<16x32xf32>
    %127 = arith.mulf %122, %124 : vector<16x32xf32>
    %128 = arith.addf %126, %127 : vector<16x32xf32>
    %129 = math.tanh %128 : vector<16x32xf32>
    %130 = arith.mulf %125, %129 : vector<16x32xf32>
    %cst_41 = arith.constant dense<0.000000e+00> : vector<16x128xf32>
    %131 = tpu.matmul %130, %9, %cst_41 {dimension_numbers = #tpu.dot_dimension_numbers<[1], [0], [0], [1], [0, 0, 1, 1], [], []>} : vector<16x32xf32>, vector<32x128xf32>, vector<16x128xf32> -> vector<16x128xf32>
    %cst_42 = arith.constant dense<0.000000e+00> : vector<16x128xf32>
    %132 = tpu.matmul %106, %10, %cst_42 {dimension_numbers = #tpu.dot_dimension_numbers<[1], [0], [0], [1], [0, 0, 1, 1], [], []>} : vector<16x32xf32>, vector<32x128xf32>, vector<16x128xf32> -> vector<16x128xf32>
    %133 = arith.addf %131, %132 : vector<16x128xf32>
    %134 = arith.addf %133, %13 : vector<16x128xf32>
    %135 = arith.mulf %134, %25 : vector<16x128xf32>
    %136 = math.tanh %135 : vector<16x128xf32>
    %137 = arith.mulf %136, %25 : vector<16x128xf32>
    %138 = arith.addf %137, %28 : vector<16x128xf32>
    %139 = vector.extract_strided_slice %138 {offsets = [0, 0], sizes = [16, 32], strides = [1, 1]} : vector<16x128xf32> to vector<16x32xf32>
    %140 = vector.extract_strided_slice %138 {offsets = [0, 32], sizes = [16, 32], strides = [1, 1]} : vector<16x128xf32> to vector<16x32xf32>
    %141 = vector.extract_strided_slice %138 {offsets = [0, 64], sizes = [16, 32], strides = [1, 1]} : vector<16x128xf32> to vector<16x32xf32>
    %142 = vector.extract_strided_slice %138 {offsets = [0, 96], sizes = [16, 32], strides = [1, 1]} : vector<16x128xf32> to vector<16x32xf32>
    %143 = arith.mulf %140, %104 : vector<16x32xf32>
    %144 = arith.mulf %139, %141 : vector<16x32xf32>
    %145 = arith.addf %143, %144 : vector<16x32xf32>
    %146 = math.tanh %145 : vector<16x32xf32>
    %147 = arith.mulf %142, %146 : vector<16x32xf32>
    %148 = arith.index_cast %c2_i32 : i32 to index
    %c0_43 = arith.constant 0 : index
    %c0_44 = arith.constant 0 : index
    %149 = vector.load %arg8[%148, %c0_43, %c0_44] : memref<8x32x128xf32, #tpu.memory_space<vmem>>, vector<1x32x128xf32>
    %150 = vector.shape_cast %149 : vector<1x32x128xf32> to vector<32x128xf32>
    %cst_45 = arith.constant dense<0.000000e+00> : vector<16x128xf32>
    %151 = tpu.matmul %147, %150, %cst_45 {dimension_numbers = #tpu.dot_dimension_numbers<[1], [0], [0], [1], [0, 0, 1, 1], [], []>} : vector<16x32xf32>, vector<32x128xf32>, vector<16x128xf32> -> vector<16x128xf32>
    %152 = arith.addf %111, %151 : vector<16x128xf32>
    %c3_i32 = arith.constant 3 : i32
    %c16_i32_46 = arith.constant 16 : i32
    %153 = arith.muli %c3_i32, %c16_i32_46 : i32
    %154 = tpu.assume_multiple %153, 16 : i32
    %155 = arith.index_cast %154 : i32 to index
    %c0_47 = arith.constant 0 : index
    %156 = vector.load %arg11[%155, %c0_47] : memref<128x128xf32, #tpu.memory_space<vmem>>, vector<16x128xf32>
    %cst_48 = arith.constant dense<0.000000e+00> : vector<16x128xf32>
    %157 = tpu.matmul %130, %8, %cst_48 {dimension_numbers = #tpu.dot_dimension_numbers<[1], [0], [0], [1], [0, 0, 1, 1], [], []>} : vector<16x32xf32>, vector<32x128xf32>, vector<16x128xf32> -> vector<16x128xf32>
    %158 = arith.addf %156, %157 : vector<16x128xf32>
    %159 = arith.mulf %158, %25 : vector<16x128xf32>
    %160 = math.tanh %159 : vector<16x128xf32>
    %161 = arith.mulf %160, %25 : vector<16x128xf32>
    %162 = arith.addf %161, %28 : vector<16x128xf32>
    %163 = vector.extract_strided_slice %162 {offsets = [0, 0], sizes = [16, 32], strides = [1, 1]} : vector<16x128xf32> to vector<16x32xf32>
    %164 = vector.extract_strided_slice %162 {offsets = [0, 32], sizes = [16, 32], strides = [1, 1]} : vector<16x128xf32> to vector<16x32xf32>
    %165 = vector.extract_strided_slice %162 {offsets = [0, 64], sizes = [16, 32], strides = [1, 1]} : vector<16x128xf32> to vector<16x32xf32>
    %166 = vector.extract_strided_slice %162 {offsets = [0, 96], sizes = [16, 32], strides = [1, 1]} : vector<16x128xf32> to vector<16x32xf32>
    %167 = arith.mulf %164, %128 : vector<16x32xf32>
    %168 = arith.mulf %163, %165 : vector<16x32xf32>
    %169 = arith.addf %167, %168 : vector<16x32xf32>
    %170 = math.tanh %169 : vector<16x32xf32>
    %171 = arith.mulf %166, %170 : vector<16x32xf32>
    %cst_49 = arith.constant dense<0.000000e+00> : vector<16x128xf32>
    %172 = tpu.matmul %171, %9, %cst_49 {dimension_numbers = #tpu.dot_dimension_numbers<[1], [0], [0], [1], [0, 0, 1, 1], [], []>} : vector<16x32xf32>, vector<32x128xf32>, vector<16x128xf32> -> vector<16x128xf32>
    %cst_50 = arith.constant dense<0.000000e+00> : vector<16x128xf32>
    %173 = tpu.matmul %147, %10, %cst_50 {dimension_numbers = #tpu.dot_dimension_numbers<[1], [0], [0], [1], [0, 0, 1, 1], [], []>} : vector<16x32xf32>, vector<32x128xf32>, vector<16x128xf32> -> vector<16x128xf32>
    %174 = arith.addf %172, %173 : vector<16x128xf32>
    %175 = arith.addf %174, %13 : vector<16x128xf32>
    %176 = arith.mulf %175, %25 : vector<16x128xf32>
    %177 = math.tanh %176 : vector<16x128xf32>
    %178 = arith.mulf %177, %25 : vector<16x128xf32>
    %179 = arith.addf %178, %28 : vector<16x128xf32>
    %180 = vector.extract_strided_slice %179 {offsets = [0, 0], sizes = [16, 32], strides = [1, 1]} : vector<16x128xf32> to vector<16x32xf32>
    %181 = vector.extract_strided_slice %179 {offsets = [0, 32], sizes = [16, 32], strides = [1, 1]} : vector<16x128xf32> to vector<16x32xf32>
    %182 = vector.extract_strided_slice %179 {offsets = [0, 64], sizes = [16, 32], strides = [1, 1]} : vector<16x128xf32> to vector<16x32xf32>
    %183 = vector.extract_strided_slice %179 {offsets = [0, 96], sizes = [16, 32], strides = [1, 1]} : vector<16x128xf32> to vector<16x32xf32>
    %184 = arith.mulf %181, %145 : vector<16x32xf32>
    %185 = arith.mulf %180, %182 : vector<16x32xf32>
    %186 = arith.addf %184, %185 : vector<16x32xf32>
    %187 = math.tanh %186 : vector<16x32xf32>
    %188 = arith.mulf %183, %187 : vector<16x32xf32>
    %189 = arith.index_cast %c3_i32 : i32 to index
    %c0_51 = arith.constant 0 : index
    %c0_52 = arith.constant 0 : index
    %190 = vector.load %arg8[%189, %c0_51, %c0_52] : memref<8x32x128xf32, #tpu.memory_space<vmem>>, vector<1x32x128xf32>
    %191 = vector.shape_cast %190 : vector<1x32x128xf32> to vector<32x128xf32>
    %cst_53 = arith.constant dense<0.000000e+00> : vector<16x128xf32>
    %192 = tpu.matmul %188, %191, %cst_53 {dimension_numbers = #tpu.dot_dimension_numbers<[1], [0], [0], [1], [0, 0, 1, 1], [], []>} : vector<16x32xf32>, vector<32x128xf32>, vector<16x128xf32> -> vector<16x128xf32>
    %193 = arith.addf %152, %192 : vector<16x128xf32>
    %c4_i32 = arith.constant 4 : i32
    %c16_i32_54 = arith.constant 16 : i32
    %194 = arith.muli %c4_i32, %c16_i32_54 : i32
    %195 = tpu.assume_multiple %194, 16 : i32
    %196 = arith.index_cast %195 : i32 to index
    %c0_55 = arith.constant 0 : index
    %197 = vector.load %arg11[%196, %c0_55] : memref<128x128xf32, #tpu.memory_space<vmem>>, vector<16x128xf32>
    %cst_56 = arith.constant dense<0.000000e+00> : vector<16x128xf32>
    %198 = tpu.matmul %171, %8, %cst_56 {dimension_numbers = #tpu.dot_dimension_numbers<[1], [0], [0], [1], [0, 0, 1, 1], [], []>} : vector<16x32xf32>, vector<32x128xf32>, vector<16x128xf32> -> vector<16x128xf32>
    %199 = arith.addf %197, %198 : vector<16x128xf32>
    %200 = arith.mulf %199, %25 : vector<16x128xf32>
    %201 = math.tanh %200 : vector<16x128xf32>
    %202 = arith.mulf %201, %25 : vector<16x128xf32>
    %203 = arith.addf %202, %28 : vector<16x128xf32>
    %204 = vector.extract_strided_slice %203 {offsets = [0, 0], sizes = [16, 32], strides = [1, 1]} : vector<16x128xf32> to vector<16x32xf32>
    %205 = vector.extract_strided_slice %203 {offsets = [0, 32], sizes = [16, 32], strides = [1, 1]} : vector<16x128xf32> to vector<16x32xf32>
    %206 = vector.extract_strided_slice %203 {offsets = [0, 64], sizes = [16, 32], strides = [1, 1]} : vector<16x128xf32> to vector<16x32xf32>
    %207 = vector.extract_strided_slice %203 {offsets = [0, 96], sizes = [16, 32], strides = [1, 1]} : vector<16x128xf32> to vector<16x32xf32>
    %208 = arith.mulf %205, %169 : vector<16x32xf32>
    %209 = arith.mulf %204, %206 : vector<16x32xf32>
    %210 = arith.addf %208, %209 : vector<16x32xf32>
    %211 = math.tanh %210 : vector<16x32xf32>
    %212 = arith.mulf %207, %211 : vector<16x32xf32>
    %cst_57 = arith.constant dense<0.000000e+00> : vector<16x128xf32>
    %213 = tpu.matmul %212, %9, %cst_57 {dimension_numbers = #tpu.dot_dimension_numbers<[1], [0], [0], [1], [0, 0, 1, 1], [], []>} : vector<16x32xf32>, vector<32x128xf32>, vector<16x128xf32> -> vector<16x128xf32>
    %cst_58 = arith.constant dense<0.000000e+00> : vector<16x128xf32>
    %214 = tpu.matmul %188, %10, %cst_58 {dimension_numbers = #tpu.dot_dimension_numbers<[1], [0], [0], [1], [0, 0, 1, 1], [], []>} : vector<16x32xf32>, vector<32x128xf32>, vector<16x128xf32> -> vector<16x128xf32>
    %215 = arith.addf %213, %214 : vector<16x128xf32>
    %216 = arith.addf %215, %13 : vector<16x128xf32>
    %217 = arith.mulf %216, %25 : vector<16x128xf32>
    %218 = math.tanh %217 : vector<16x128xf32>
    %219 = arith.mulf %218, %25 : vector<16x128xf32>
    %220 = arith.addf %219, %28 : vector<16x128xf32>
    %221 = vector.extract_strided_slice %220 {offsets = [0, 0], sizes = [16, 32], strides = [1, 1]} : vector<16x128xf32> to vector<16x32xf32>
    %222 = vector.extract_strided_slice %220 {offsets = [0, 32], sizes = [16, 32], strides = [1, 1]} : vector<16x128xf32> to vector<16x32xf32>
    %223 = vector.extract_strided_slice %220 {offsets = [0, 64], sizes = [16, 32], strides = [1, 1]} : vector<16x128xf32> to vector<16x32xf32>
    %224 = vector.extract_strided_slice %220 {offsets = [0, 96], sizes = [16, 32], strides = [1, 1]} : vector<16x128xf32> to vector<16x32xf32>
    %225 = arith.mulf %222, %186 : vector<16x32xf32>
    %226 = arith.mulf %221, %223 : vector<16x32xf32>
    %227 = arith.addf %225, %226 : vector<16x32xf32>
    %228 = math.tanh %227 : vector<16x32xf32>
    %229 = arith.mulf %224, %228 : vector<16x32xf32>
    %230 = arith.index_cast %c4_i32 : i32 to index
    %c0_59 = arith.constant 0 : index
    %c0_60 = arith.constant 0 : index
    %231 = vector.load %arg8[%230, %c0_59, %c0_60] : memref<8x32x128xf32, #tpu.memory_space<vmem>>, vector<1x32x128xf32>
    %232 = vector.shape_cast %231 : vector<1x32x128xf32> to vector<32x128xf32>
    %cst_61 = arith.constant dense<0.000000e+00> : vector<16x128xf32>
    %233 = tpu.matmul %229, %232, %cst_61 {dimension_numbers = #tpu.dot_dimension_numbers<[1], [0], [0], [1], [0, 0, 1, 1], [], []>} : vector<16x32xf32>, vector<32x128xf32>, vector<16x128xf32> -> vector<16x128xf32>
    %234 = arith.addf %193, %233 : vector<16x128xf32>
    %c5_i32 = arith.constant 5 : i32
    %c16_i32_62 = arith.constant 16 : i32
    %235 = arith.muli %c5_i32, %c16_i32_62 : i32
    %236 = tpu.assume_multiple %235, 16 : i32
    %237 = arith.index_cast %236 : i32 to index
    %c0_63 = arith.constant 0 : index
    %238 = vector.load %arg11[%237, %c0_63] : memref<128x128xf32, #tpu.memory_space<vmem>>, vector<16x128xf32>
    %cst_64 = arith.constant dense<0.000000e+00> : vector<16x128xf32>
    %239 = tpu.matmul %212, %8, %cst_64 {dimension_numbers = #tpu.dot_dimension_numbers<[1], [0], [0], [1], [0, 0, 1, 1], [], []>} : vector<16x32xf32>, vector<32x128xf32>, vector<16x128xf32> -> vector<16x128xf32>
    %240 = arith.addf %238, %239 : vector<16x128xf32>
    %241 = arith.mulf %240, %25 : vector<16x128xf32>
    %242 = math.tanh %241 : vector<16x128xf32>
    %243 = arith.mulf %242, %25 : vector<16x128xf32>
    %244 = arith.addf %243, %28 : vector<16x128xf32>
    %245 = vector.extract_strided_slice %244 {offsets = [0, 0], sizes = [16, 32], strides = [1, 1]} : vector<16x128xf32> to vector<16x32xf32>
    %246 = vector.extract_strided_slice %244 {offsets = [0, 32], sizes = [16, 32], strides = [1, 1]} : vector<16x128xf32> to vector<16x32xf32>
    %247 = vector.extract_strided_slice %244 {offsets = [0, 64], sizes = [16, 32], strides = [1, 1]} : vector<16x128xf32> to vector<16x32xf32>
    %248 = vector.extract_strided_slice %244 {offsets = [0, 96], sizes = [16, 32], strides = [1, 1]} : vector<16x128xf32> to vector<16x32xf32>
    %249 = arith.mulf %246, %210 : vector<16x32xf32>
    %250 = arith.mulf %245, %247 : vector<16x32xf32>
    %251 = arith.addf %249, %250 : vector<16x32xf32>
    %252 = math.tanh %251 : vector<16x32xf32>
    %253 = arith.mulf %248, %252 : vector<16x32xf32>
    %cst_65 = arith.constant dense<0.000000e+00> : vector<16x128xf32>
    %254 = tpu.matmul %253, %9, %cst_65 {dimension_numbers = #tpu.dot_dimension_numbers<[1], [0], [0], [1], [0, 0, 1, 1], [], []>} : vector<16x32xf32>, vector<32x128xf32>, vector<16x128xf32> -> vector<16x128xf32>
    %cst_66 = arith.constant dense<0.000000e+00> : vector<16x128xf32>
    %255 = tpu.matmul %229, %10, %cst_66 {dimension_numbers = #tpu.dot_dimension_numbers<[1], [0], [0], [1], [0, 0, 1, 1], [], []>} : vector<16x32xf32>, vector<32x128xf32>, vector<16x128xf32> -> vector<16x128xf32>
    %256 = arith.addf %254, %255 : vector<16x128xf32>
    %257 = arith.addf %256, %13 : vector<16x128xf32>
    %258 = arith.mulf %257, %25 : vector<16x128xf32>
    %259 = math.tanh %258 : vector<16x128xf32>
    %260 = arith.mulf %259, %25 : vector<16x128xf32>
    %261 = arith.addf %260, %28 : vector<16x128xf32>
    %262 = vector.extract_strided_slice %261 {offsets = [0, 0], sizes = [16, 32], strides = [1, 1]} : vector<16x128xf32> to vector<16x32xf32>
    %263 = vector.extract_strided_slice %261 {offsets = [0, 32], sizes = [16, 32], strides = [1, 1]} : vector<16x128xf32> to vector<16x32xf32>
    %264 = vector.extract_strided_slice %261 {offsets = [0, 64], sizes = [16, 32], strides = [1, 1]} : vector<16x128xf32> to vector<16x32xf32>
    %265 = vector.extract_strided_slice %261 {offsets = [0, 96], sizes = [16, 32], strides = [1, 1]} : vector<16x128xf32> to vector<16x32xf32>
    %266 = arith.mulf %263, %227 : vector<16x32xf32>
    %267 = arith.mulf %262, %264 : vector<16x32xf32>
    %268 = arith.addf %266, %267 : vector<16x32xf32>
    %269 = math.tanh %268 : vector<16x32xf32>
    %270 = arith.mulf %265, %269 : vector<16x32xf32>
    %271 = arith.index_cast %c5_i32 : i32 to index
    %c0_67 = arith.constant 0 : index
    %c0_68 = arith.constant 0 : index
    %272 = vector.load %arg8[%271, %c0_67, %c0_68] : memref<8x32x128xf32, #tpu.memory_space<vmem>>, vector<1x32x128xf32>
    %273 = vector.shape_cast %272 : vector<1x32x128xf32> to vector<32x128xf32>
    %cst_69 = arith.constant dense<0.000000e+00> : vector<16x128xf32>
    %274 = tpu.matmul %270, %273, %cst_69 {dimension_numbers = #tpu.dot_dimension_numbers<[1], [0], [0], [1], [0, 0, 1, 1], [], []>} : vector<16x32xf32>, vector<32x128xf32>, vector<16x128xf32> -> vector<16x128xf32>
    %275 = arith.addf %234, %274 : vector<16x128xf32>
    %c6_i32 = arith.constant 6 : i32
    %c16_i32_70 = arith.constant 16 : i32
    %276 = arith.muli %c6_i32, %c16_i32_70 : i32
    %277 = tpu.assume_multiple %276, 16 : i32
    %278 = arith.index_cast %277 : i32 to index
    %c0_71 = arith.constant 0 : index
    %279 = vector.load %arg11[%278, %c0_71] : memref<128x128xf32, #tpu.memory_space<vmem>>, vector<16x128xf32>
    %cst_72 = arith.constant dense<0.000000e+00> : vector<16x128xf32>
    %280 = tpu.matmul %253, %8, %cst_72 {dimension_numbers = #tpu.dot_dimension_numbers<[1], [0], [0], [1], [0, 0, 1, 1], [], []>} : vector<16x32xf32>, vector<32x128xf32>, vector<16x128xf32> -> vector<16x128xf32>
    %281 = arith.addf %279, %280 : vector<16x128xf32>
    %282 = arith.mulf %281, %25 : vector<16x128xf32>
    %283 = math.tanh %282 : vector<16x128xf32>
    %284 = arith.mulf %283, %25 : vector<16x128xf32>
    %285 = arith.addf %284, %28 : vector<16x128xf32>
    %286 = vector.extract_strided_slice %285 {offsets = [0, 0], sizes = [16, 32], strides = [1, 1]} : vector<16x128xf32> to vector<16x32xf32>
    %287 = vector.extract_strided_slice %285 {offsets = [0, 32], sizes = [16, 32], strides = [1, 1]} : vector<16x128xf32> to vector<16x32xf32>
    %288 = vector.extract_strided_slice %285 {offsets = [0, 64], sizes = [16, 32], strides = [1, 1]} : vector<16x128xf32> to vector<16x32xf32>
    %289 = vector.extract_strided_slice %285 {offsets = [0, 96], sizes = [16, 32], strides = [1, 1]} : vector<16x128xf32> to vector<16x32xf32>
    %290 = arith.mulf %287, %251 : vector<16x32xf32>
    %291 = arith.mulf %286, %288 : vector<16x32xf32>
    %292 = arith.addf %290, %291 : vector<16x32xf32>
    %293 = math.tanh %292 : vector<16x32xf32>
    %294 = arith.mulf %289, %293 : vector<16x32xf32>
    %cst_73 = arith.constant dense<0.000000e+00> : vector<16x128xf32>
    %295 = tpu.matmul %294, %9, %cst_73 {dimension_numbers = #tpu.dot_dimension_numbers<[1], [0], [0], [1], [0, 0, 1, 1], [], []>} : vector<16x32xf32>, vector<32x128xf32>, vector<16x128xf32> -> vector<16x128xf32>
    %cst_74 = arith.constant dense<0.000000e+00> : vector<16x128xf32>
    %296 = tpu.matmul %270, %10, %cst_74 {dimension_numbers = #tpu.dot_dimension_numbers<[1], [0], [0], [1], [0, 0, 1, 1], [], []>} : vector<16x32xf32>, vector<32x128xf32>, vector<16x128xf32> -> vector<16x128xf32>
    %297 = arith.addf %295, %296 : vector<16x128xf32>
    %298 = arith.addf %297, %13 : vector<16x128xf32>
    %299 = arith.mulf %298, %25 : vector<16x128xf32>
    %300 = math.tanh %299 : vector<16x128xf32>
    %301 = arith.mulf %300, %25 : vector<16x128xf32>
    %302 = arith.addf %301, %28 : vector<16x128xf32>
    %303 = vector.extract_strided_slice %302 {offsets = [0, 0], sizes = [16, 32], strides = [1, 1]} : vector<16x128xf32> to vector<16x32xf32>
    %304 = vector.extract_strided_slice %302 {offsets = [0, 32], sizes = [16, 32], strides = [1, 1]} : vector<16x128xf32> to vector<16x32xf32>
    %305 = vector.extract_strided_slice %302 {offsets = [0, 64], sizes = [16, 32], strides = [1, 1]} : vector<16x128xf32> to vector<16x32xf32>
    %306 = vector.extract_strided_slice %302 {offsets = [0, 96], sizes = [16, 32], strides = [1, 1]} : vector<16x128xf32> to vector<16x32xf32>
    %307 = arith.mulf %304, %268 : vector<16x32xf32>
    %308 = arith.mulf %303, %305 : vector<16x32xf32>
    %309 = arith.addf %307, %308 : vector<16x32xf32>
    %310 = math.tanh %309 : vector<16x32xf32>
    %311 = arith.mulf %306, %310 : vector<16x32xf32>
    %312 = arith.index_cast %c6_i32 : i32 to index
    %c0_75 = arith.constant 0 : index
    %c0_76 = arith.constant 0 : index
    %313 = vector.load %arg8[%312, %c0_75, %c0_76] : memref<8x32x128xf32, #tpu.memory_space<vmem>>, vector<1x32x128xf32>
    %314 = vector.shape_cast %313 : vector<1x32x128xf32> to vector<32x128xf32>
    %cst_77 = arith.constant dense<0.000000e+00> : vector<16x128xf32>
    %315 = tpu.matmul %311, %314, %cst_77 {dimension_numbers = #tpu.dot_dimension_numbers<[1], [0], [0], [1], [0, 0, 1, 1], [], []>} : vector<16x32xf32>, vector<32x128xf32>, vector<16x128xf32> -> vector<16x128xf32>
    %316 = arith.addf %275, %315 : vector<16x128xf32>
    %c7_i32 = arith.constant 7 : i32
    %c16_i32_78 = arith.constant 16 : i32
    %317 = arith.muli %c7_i32, %c16_i32_78 : i32
    %318 = tpu.assume_multiple %317, 16 : i32
    %319 = arith.index_cast %318 : i32 to index
    %c0_79 = arith.constant 0 : index
    %320 = vector.load %arg11[%319, %c0_79] : memref<128x128xf32, #tpu.memory_space<vmem>>, vector<16x128xf32>
    %cst_80 = arith.constant dense<0.000000e+00> : vector<16x128xf32>
    %321 = tpu.matmul %294, %8, %cst_80 {dimension_numbers = #tpu.dot_dimension_numbers<[1], [0], [0], [1], [0, 0, 1, 1], [], []>} : vector<16x32xf32>, vector<32x128xf32>, vector<16x128xf32> -> vector<16x128xf32>
    %322 = arith.addf %320, %321 : vector<16x128xf32>
    %323 = arith.mulf %322, %25 : vector<16x128xf32>
    %324 = math.tanh %323 : vector<16x128xf32>
    %325 = arith.mulf %324, %25 : vector<16x128xf32>
    %326 = arith.addf %325, %28 : vector<16x128xf32>
    %327 = vector.extract_strided_slice %326 {offsets = [0, 0], sizes = [16, 32], strides = [1, 1]} : vector<16x128xf32> to vector<16x32xf32>
    %328 = vector.extract_strided_slice %326 {offsets = [0, 32], sizes = [16, 32], strides = [1, 1]} : vector<16x128xf32> to vector<16x32xf32>
    %329 = vector.extract_strided_slice %326 {offsets = [0, 64], sizes = [16, 32], strides = [1, 1]} : vector<16x128xf32> to vector<16x32xf32>
    %330 = vector.extract_strided_slice %326 {offsets = [0, 96], sizes = [16, 32], strides = [1, 1]} : vector<16x128xf32> to vector<16x32xf32>
    %331 = arith.mulf %328, %292 : vector<16x32xf32>
    %332 = arith.mulf %327, %329 : vector<16x32xf32>
    %333 = arith.addf %331, %332 : vector<16x32xf32>
    %334 = math.tanh %333 : vector<16x32xf32>
    %335 = arith.mulf %330, %334 : vector<16x32xf32>
    %cst_81 = arith.constant dense<0.000000e+00> : vector<16x128xf32>
    %336 = tpu.matmul %335, %9, %cst_81 {dimension_numbers = #tpu.dot_dimension_numbers<[1], [0], [0], [1], [0, 0, 1, 1], [], []>} : vector<16x32xf32>, vector<32x128xf32>, vector<16x128xf32> -> vector<16x128xf32>
    %cst_82 = arith.constant dense<0.000000e+00> : vector<16x128xf32>
    %337 = tpu.matmul %311, %10, %cst_82 {dimension_numbers = #tpu.dot_dimension_numbers<[1], [0], [0], [1], [0, 0, 1, 1], [], []>} : vector<16x32xf32>, vector<32x128xf32>, vector<16x128xf32> -> vector<16x128xf32>
    %338 = arith.addf %336, %337 : vector<16x128xf32>
    %339 = arith.addf %338, %13 : vector<16x128xf32>
    %340 = arith.mulf %339, %25 : vector<16x128xf32>
    %341 = math.tanh %340 : vector<16x128xf32>
    %342 = arith.mulf %341, %25 : vector<16x128xf32>
    %343 = arith.addf %342, %28 : vector<16x128xf32>
    %344 = vector.extract_strided_slice %343 {offsets = [0, 0], sizes = [16, 32], strides = [1, 1]} : vector<16x128xf32> to vector<16x32xf32>
    %345 = vector.extract_strided_slice %343 {offsets = [0, 32], sizes = [16, 32], strides = [1, 1]} : vector<16x128xf32> to vector<16x32xf32>
    %346 = vector.extract_strided_slice %343 {offsets = [0, 64], sizes = [16, 32], strides = [1, 1]} : vector<16x128xf32> to vector<16x32xf32>
    %347 = vector.extract_strided_slice %343 {offsets = [0, 96], sizes = [16, 32], strides = [1, 1]} : vector<16x128xf32> to vector<16x32xf32>
    %348 = arith.mulf %345, %309 : vector<16x32xf32>
    %349 = arith.mulf %344, %346 : vector<16x32xf32>
    %350 = arith.addf %348, %349 : vector<16x32xf32>
    %351 = math.tanh %350 : vector<16x32xf32>
    %352 = arith.mulf %347, %351 : vector<16x32xf32>
    %353 = arith.index_cast %c7_i32 : i32 to index
    %c0_83 = arith.constant 0 : index
    %c0_84 = arith.constant 0 : index
    %354 = vector.load %arg8[%353, %c0_83, %c0_84] : memref<8x32x128xf32, #tpu.memory_space<vmem>>, vector<1x32x128xf32>
    %355 = vector.shape_cast %354 : vector<1x32x128xf32> to vector<32x128xf32>
    %cst_85 = arith.constant dense<0.000000e+00> : vector<16x128xf32>
    %356 = tpu.matmul %352, %355, %cst_85 {dimension_numbers = #tpu.dot_dimension_numbers<[1], [0], [0], [1], [0, 0, 1, 1], [], []>} : vector<16x32xf32>, vector<32x128xf32>, vector<16x128xf32> -> vector<16x128xf32>
    %357 = arith.addf %316, %356 : vector<16x128xf32>
    %c8_i32 = arith.constant 8 : i32
    %c0_86 = arith.constant 0 : index
    %c0_87 = arith.constant 0 : index
    %358 = vector.load %arg10[%c0_86, %c0_87] : memref<16x128xf32, #tpu.memory_space<vmem>>, vector<16x128xf32>
    tpu.vector_store %arg10[%c0_86, %c0_87], %357 {strides = array<i32>} : memref<16x128xf32, #tpu.memory_space<vmem>>, vector<16x128xf32>,
    return
  }
  func.func @transform_0(%arg0: i32) -> (i32, i32, i32) {
    %c0_i32 = arith.constant 0 : i32
    %c0_i32_0 = arith.constant 0 : i32
    %c0_i32_1 = arith.constant 0 : i32
    return %arg0, %c0_i32, %c0_i32_0 : i32, i32, i32
  }
  func.func @transform_1(%arg0: i32) -> (i32, i32) {
    %c0_i32 = arith.constant 0 : i32
    %c0_i32_0 = arith.constant 0 : i32
    %c0_i32_1 = arith.constant 0 : i32
    return %c0_i32, %c0_i32_0 : i32, i32
  }
  func.func @transform_2(%arg0: i32) -> (i32, i32) {
    %c0_i32 = arith.constant 0 : i32
    %c0_i32_0 = arith.constant 0 : i32
    %c0_i32_1 = arith.constant 0 : i32
    return %c0_i32, %c0_i32_0 : i32, i32
  }
  func.func @transform_3(%arg0: i32) -> (i32, i32) {
    %c0_i32 = arith.constant 0 : i32
    %c0_i32_0 = arith.constant 0 : i32
    %c0_i32_1 = arith.constant 0 : i32
    return %c0_i32, %c0_i32_0 : i32, i32
  }
  func.func @transform_4(%arg0: i32) -> (i32, i32) {
    %c0_i32 = arith.constant 0 : i32
    %c0_i32_0 = arith.constant 0 : i32
    %c0_i32_1 = arith.constant 0 : i32
    return %c0_i32, %c0_i32_0 : i32, i32
  }
  func.func @transform_5(%arg0: i32) -> (i32, i32) {
    %c0_i32 = arith.constant 0 : i32
    %c0_i32_0 = arith.constant 0 : i32
    %c0_i32_1 = arith.constant 0 : i32
    return %c0_i32, %c0_i32_0 : i32, i32
  }
  func.func @transform_6(%arg0: i32) -> (i32, i32) {
    %c0_i32 = arith.constant 0 : i32
    %c0_i32_0 = arith.constant 0 : i32
    %c0_i32_1 = arith.constant 0 : i32
    return %c0_i32, %c0_i32_0 : i32, i32
  }
  func.func @transform_7(%arg0: i32) -> (i32, i32, i32) {
    %c0_i32 = arith.constant 0 : i32
    %c0_i32_0 = arith.constant 0 : i32
    %c0_i32_1 = arith.constant 0 : i32
    %c0_i32_2 = arith.constant 0 : i32
    return %c0_i32, %c0_i32_0, %c0_i32_1 : i32, i32, i32
  }
  func.func @transform_8(%arg0: i32) -> (i32, i32) {
    %c0_i32 = arith.constant 0 : i32
    %c0_i32_0 = arith.constant 0 : i32
    %c0_i32_1 = arith.constant 0 : i32
    return %c0_i32, %c0_i32_0 : i32, i32
  }
  func.func @transform_9(%arg0: i32) -> (i32, i32) {
    %c0_i32 = arith.constant 0 : i32
    %c0_i32_0 = arith.constant 0 : i32
    return %arg0, %c0_i32 : i32, i32
  }
}

</mosaic_0001>

<bundles_post_ra>
// kernel: tpu_custom_call.1
= control target key start
LH: loop header
LB: loop body
LE: loop exit
PB: predicated region body
PF: predicated region fallthrough
CT: control target
= control target key end

     0   :  { %14 = vsyncpa [#allocation4], 0  ;;  %s5620_s0 = inlined_call_operand.vmem [shape: f32[1,128,16], index: 0, kind: input, shape index: {}]   ;;  %s5621_s1 = inlined_call_operand.vmem [shape: f32[16,128], index: 1, kind: input, shape index: {}]   ;;  %s5622_s2 = inlined_call_operand.vmem [shape: f32[32,128], index: 2, kind: input, shape index: {}]   ;;  %s5623_s3 = inlined_call_operand.vmem [shape: f32[1,128], index: 3, kind: input, shape index: {}]   ;;  %s5624_s4 = inlined_call_operand.vmem [shape: f32[32,128], index: 4, kind: input, shape index: {}]   ;;  %s5625_s5 = inlined_call_operand.vmem [shape: f32[32,128], index: 5, kind: input, shape index: {}]   ;;  %s5626_s6 = inlined_call_operand.vmem [shape: f32[1,128], index: 6, kind: input, shape index: {}]   ;;  %s5627_s7 = inlined_call_operand.hbm [shape: f32[8,32,128], index: 7, kind: input, shape index: {}]   ;;  %s5628_s8 = inlined_call_operand.vmem [shape: f32[1,128], index: 8, kind: input, shape index: {}]   ;;  %s5629_s9 = inlined_call_operand.hbm [shape: f32[16,128], index: 9, kind: output, shape index: {}]  }
   0x1   :  { %15 = vsyncpa [#allocation5], 0  ;;  %s4859_s30 = smov [#allocation3]   ;;  %s4811_s13 = scalar_lea.hbm %s5627_s7, 4096 }
   0x2   :  { %s35_s10 = sshll.u32 %s4859_s30, 4  ;;  %p4812_p0 = scmp.ne.s32.totalorder %s5627_s7, %s4811_s13  ;;  %s36_s10 = int_to_ptr.vmem [resolvable:$true] %s35_s10 }
   0x3   :  { %p4815_p1 = scmp.lt.u32.totalorder %s4811_s13, %s5627_s7 }
   0x5   :  { %p4817_p2 = pnand %p4815_p1, %p4812_p0 }
   0x7   :  { %4820 = shalt.err (!%p4817_p2)
}
   0x8   :  { %s4821_s18 = scalar_lea.vmem %s36_s10, 4096  ;;  %p4826_p4 = scmp.lt.s32.totalorder %s36_s10, %s36_s10 }
   0x9   :  { %p4822_p3 = scmp.ne.s32.totalorder %s36_s10, %s4821_s18  ;;  %p4827_p5 = scmp.lt.s32.totalorder %s4821_s18, %s4821_s18 }
   0xb   :  { %p4828_p6 = por %p4827_p5, %p4826_p4 }
   0xd   :  { %p4829_p7 = pnand %p4828_p6, %p4822_p3 }
   0xf   :  { %4832 = shalt.err (!%p4829_p7)
}
  0x10   :  { %s4860_s19 = smov 128   ;;  %s4861_s20 = smov 8  }
  0x11   :  { %41 = dma.hbm_to_vmem [thread:$0]  %s5627_s7, 4096, %s36_s10, [#allocation4], %s4860_s19, %s4860_s19, %s4861_s20  }
  0x12   :  { %4855 = dma.done.wait [#allocation4], 4096  }
  0x13   :  { %4856 = vsyncadd [#allocation4], 4294963200  ;;  %v4862_v0 = vmov 0.0   ;;  %vm72_vm0 = vcmask 130048   ;;  %v63_v1 = vld [vmem:[%s5621_s1] sm:$0xff]  ;;  %v64_v2 = vld [vmem:[%s5621_s1 + $0x8] sm:$0xff]  ;;  %v308_v26 = vlaneseq }
  0x14   :  { %4016 = vmatprep.mubr.f32.mxu1 %v4862_v0  ;;  %v47_v3 = vld [vmem:[%s5620_s0] sm:$0xff]  ;;  %v4349_v4 = vpack.c.bf16 %v64_v2, %v63_v1  ;;  %v283_v6 = vld [vmem:[%s5622_s2 + $0x8] sm:$0xff]  ;;  %v284_v9 = vld [vmem:[%s5622_s2 + $0x10] sm:$0xff]  ;;  %v4863_v29 = vmov 0.5   ;;  %s4864_s24 = smov 64   ;;  %s4865_s25 = smov 32  }
  0x15   :  { %3973 = vmatprep.mubr.msk.f32.mxu0 %vm72_vm0, %v47_v3  ;;  %v282_v5 = vld [vmem:[%s5622_s2] sm:$0xff]  ;;  %v48_v8 = vld [vmem:[%s5620_s0 + $0x8] sm:$0xff]  ;;  %v49_v10 = vld [vmem:[%s5620_s0 + $0x10] sm:$0xff]  ;;  %v309_v27 = vand.u32 127, %v308_v26  ;;  %vm317_vm4 = vcmask 261120  }
  0x16   :  { %v4949_v7 = vpack.c.bf16 %v283_v6, %v282_v5  ;;  %4350 = vmatprep.subr.bf16.mxu0 %v4349_v4  ;;  %v285_v11 = vld [vmem:[%s5622_s2 + $0x18] sm:$0xff]  ;;  %v51_v14 = vld [vmem:[%s5620_s0 + $0x20] sm:$0xff]  ;;  %v52_v15 = vld [vmem:[%s5620_s0 + $0x28] sm:$0xff]  ;;  %s4866_s2 = smov [#allocation6]  }
  0x17   :  { %4352 = vmatpush3.bf16.msra.mxu0 %v4349_v4  ;;  %v4964_v12 = vpack.c.bf16 %v285_v11, %v284_v9  ;;  %v50_v13 = vld [vmem:[%s5620_s0 + $0x18] sm:$0xff]  ;;  %v53_v16 = vld [vmem:[%s5620_s0 + $0x30] sm:$0xff]  ;;  %v55_v18 = vld [vmem:[%s5620_s0 + $0x40] sm:$0xff]  ;;  %vm310_vm1 = vcmp.ge.s32.totalorder %v309_v27, 64  ;;  %vm311_vm2 = vcmp.lt.s32.totalorder %v309_v27, 96 }
  0x18   :  { %4354 = vmatprep.subr.bf16.mxu0 %v4949_v7  ;;  %v54_v17 = vld [vmem:[%s5620_s0 + $0x38] sm:$0xff]  ;;  %v56_v19 = vld [vmem:[%s5620_s0 + $0x48] sm:$0xff]  ;;  %v57_v20 = vld [vmem:[%s5620_s0 + $0x50] sm:$0xff] }
  0x19   :  { %v58_v21 = vld [vmem:[%s5620_s0 + $0x58] sm:$0xff]  ;;  %v59_v22 = vld [vmem:[%s5620_s0 + $0x60] sm:$0xff]  ;;  %v60_v23 = vld [vmem:[%s5620_s0 + $0x68] sm:$0xff] }
  0x1a   :  { %3974 = vmatmul.mubr.msk.f32.vlgmr.msra.gmra.mrb[0].mxu0 %vm72_vm0, %v48_v8  ;;  %v61_v24 = vld [vmem:[%s5620_s0 + $0x70] sm:$0xff]  ;;  %v62_v25 = vld [vmem:[%s5620_s0 + $0x78] sm:$0xff]  ;;  %vm312_vm3 = vmand %vm310_vm1, %vm311_vm2 }
  0x1b   :  { %4356 = vmatpush3.bf16.msra.mxu0 %v4949_v7  ;;  %3976 = vmatprep.mubr.msk.f32.mxu0 %vm72_vm0, %v49_v10  ;;  %v5033_v28 = vld [vmem:[%s5623_s3] ss:$0 sm:$0xff]  ;;  %v5035_v30 = vsel %vm312_vm3, 1.0, %v4863_v29  ;;  %v5041_v39 = vsel %vm312_vm3, 0.0, %v4863_v29  ;;  %v291_v55 = vld [vmem:[%s5625_s5 + $0x8] sm:$0xff]  ;;  %v292_v56 = vld [vmem:[%s5625_s5 + $0x10] sm:$0xff] }
  0x1c   :  { %4358 = vmatprep.subr.bf16.mxu0 %v4964_v12  ;;  %v290_v54 = vld [vmem:[%s5625_s5] sm:$0xff]  ;;  %v293_v58 = vld [vmem:[%s5625_s5 + $0x18] sm:$0xff]  ;;  %v287_v61 = vld [vmem:[%s5624_s4 + $0x8] sm:$0xff] }
  0x1d   :  { %v5066_v57 = vpack.c.bf16 %v291_v55, %v290_v54  ;;  %v5071_v59 = vpack.c.bf16 %v293_v58, %v292_v56  ;;  %v286_v60 = vld [vmem:[%s5624_s4] sm:$0xff]  ;;  %v288_v2 = vld [vmem:[%s5624_s4 + $0x10] sm:$0xff]  ;;  %v289_v3 = vld [vmem:[%s5624_s4 + $0x18] sm:$0xff] }
  0x1e   :  { %3977 = vmatmul.mubr.msk.f32.gmra.mrb[2].mxu0 %vm72_vm0, %v50_v13  ;;  %v5082_v62 = vpack.c.bf16 %v287_v61, %v286_v60  ;;  %v5096_v4 = vpack.c.bf16 %v289_v3, %v288_v2  ;;  %v5113_v11 = vld [vmem:[%s5626_s6] ss:$0 sm:$0xff]  ;;  %v645_v3 = vld [vmem:[#allocation3 + $0x8] sm:$0xff] }
  0x1f   :  { %3979 = vmatprep.mubr.msk.f32.mxu0 %vm72_vm0, %v51_v14  ;;  %4360 = vmatpush3.bf16.msra.mxu0 %v4964_v12  ;;  %v644_v2 = vld [vmem:[#allocation3] sm:$0xff] }
  0x20   :  { %4386 = vmatprep.subr.bf16.mxu0 %v4949_v7  ;;  %4362 = vmatprep.subr.bf16.mxu1 %v5066_v57 }
  0x21   :  { %4364 = vmatpush3.bf16.msra.mxu1 %v5066_v57 }
  0x22   :  { %3980 = vmatmul.mubr.msk.f32.gmra.mrb[4].mxu0 %vm72_vm0, %v52_v15  ;;  %4366 = vmatprep.subr.bf16.mxu1 %v5071_v59 }
  0x23   :  { %3982 = vmatprep.mubr.msk.f32.mxu0 %vm72_vm0, %v53_v16 }
  0x25   :  { %4368 = vmatpush3.bf16.msra.mxu1 %v5071_v59 }
  0x26   :  { %3983 = vmatmul.mubr.msk.f32.gmra.mrb[6].mxu0 %vm72_vm0, %v54_v17  ;;  %4370 = vmatprep.subr.bf16.mxu1 %v5082_v62 }
  0x27   :  { %3985 = vmatprep.mubr.msk.f32.mxu0 %vm72_vm0, %v55_v18 }
  0x28   :  { %4017 = vmatmul.mubr.f32.vlgmr.msra.gmra.mrb[0].mxu1 %v4862_v0 }
  0x29   :  { %4372 = vmatpush3.bf16.msra.mxu1 %v5082_v62 }
  0x2a   :  { %3986 = vmatmul.mubr.msk.f32.gmra.mrb[8].mxu0 %vm72_vm0, %v56_v19  ;;  %4374 = vmatprep.subr.bf16.mxu1 %v5096_v4 }
  0x2b   :  { %3988 = vmatprep.mubr.msk.f32.mxu0 %vm72_vm0, %v57_v20 }
  0x2d   :  { %4376 = vmatpush3.bf16.msra.mxu1 %v5096_v4 }
  0x2e   :  { %3989 = vmatmul.mubr.msk.f32.gmra.mrb[10].mxu0 %vm72_vm0, %v58_v21 }
  0x2f   :  { %3991 = vmatprep.mubr.msk.f32.mxu0 %vm72_vm0, %v59_v22 }
  0x32   :  { %3992 = vmatmul.mubr.msk.f32.gmra.mrb[12].mxu0 %vm72_vm0, %v60_v23 }
  0x33   :  { %3994 = vmatprep.mubr.msk.f32.mxu0 %vm72_vm0, %v61_v24 }
  0x36   :  { %3995 = vmatmul.mubr.msk.f32.gmra.mrb[14].mxu0 %vm72_vm0, %v62_v25 }
  0x37   :  { %4005 = vmatprep.mubr.f32.mxu0 %v4862_v0 }
  0x3a   :  { %4006 = vmatmul.mubr.f32.vlgmr.msra.gmra.mrb[0].mxu0 %v4862_v0 }
  0x3b   :  { %4388 = vmatpush3.bf16.msra.mxu0 %v4949_v7 }
  0x3c   :  { %4390 = vmatprep.subr.bf16.mxu0 %v4964_v12 }
  0x3f   :  { %4392 = vmatpush3.bf16.msra.mxu0 %v4964_v12 }
  0x40   :  { %4418 = vmatprep.subr.bf16.mxu0 %v4949_v7 }
 0x10d   :  { %v4007_v31 = vpop.f32.mrb[0].mxu0 }
 0x10e   :  { %v4609_v32 = vadd.f32 %v4007_v31, %v5033_v28  ;;  %v387_v33 = vpop.f32.mrb[1].mxu0 }
 0x10f   :  { %v4610_v34 = vadd.f32 %v5033_v28, %v387_v33 }
 0x110   :  { %v399_v35 = vmul.f32 %v4609_v32, %v5035_v30 }
 0x111   :  { %v398_v36 = vmul.f32 %v4610_v34, %v5035_v30 }
 0x112   :  { %4681 = vtanh.f32 %v399_v35 }
 0x113   :  { %4683 = vtanh.f32 %v398_v36 }
 0x11c   :  { %v4682_v37 = vpop.eup %4681 }
 0x11d   :  { %v4684_v38 = vpop.eup %4683  ;;  %v403_v42 = vmul.f32 %v4682_v37, %v5035_v30 }
 0x11e   :  { %v402_v40 = vmul.f32 %v4684_v38, %v5035_v30 }
 0x11f   :  { %v405_v43 = vadd.f32 %v403_v42, %v5041_v39 }
 0x120   :  { %v404_v41 = vadd.f32 %v402_v40, %v5041_v39 }
 0x121   :  { %v407_v51 = vmul.f32 0.0, %v405_v43 }
 0x122   :  { %410 = vrot.lane.b32.xlu0 %v404_v41, %s4864_s24  ;;  %v406_v48 = vmul.f32 0.0, %v404_v41 }
 0x126   :  { %412 = vrot.lane.b32.xlu0 %v405_v43, %s4864_s24 }
 0x194   :  { %v411_v44 = vpop.permute.xlu0 %410 }
 0x195   :  { %v416_v45 = vmul.f32 %v411_v44, %v404_v41 }
 0x197   :  { %420 = vrot.lane.b32.xlu1 %v416_v45, %s4865_s25 }
 0x198   :  { %v413_v46 = vpop.permute.xlu0 %412 }
 0x199   :  { %v417_v47 = vmul.f32 %v413_v46, %v405_v43 }
 0x19b   :  { %422 = vrot.lane.b32.xlu1 %v417_v47, %s4865_s25 }
 0x209   :  { %v421_v49 = vpop.permute.xlu1 %420 }
 0x20a   :  { %v5051_v50 = vadd.f32 %v421_v49, %v406_v48 }
 0x20c   :  { %4685 = vtanh.f32 %v5051_v50 }
 0x20d   :  { %v423_v52 = vpop.permute.xlu1 %422 }
 0x20e   :  { %v5054_v53 = vadd.f32 %v423_v52, %v407_v51 }
 0x210   :  { %4687 = vtanh.f32 %v5054_v53 }
 0x216   :  { %v4686_v63 = vpop.eup %4685 }
 0x217   :  { %432 = vrot.lane.b32.xlu0 %v4686_v63, %s4864_s24 }
 0x21a   :  { %v4688_v1 = vpop.eup %4687 }
 0x21b   :  { %434 = vrot.lane.b32.xlu1 %v4688_v1, %s4864_s24 }
 0x289   :  { %v433_v5 = vpop.permute.xlu0 %432 }
 0x28a   :  { %v438_v6 = vmul.f32 %v433_v5, %v404_v41  ;;  %v646_v5 = vld [vmem:[#allocation3 + $0x10] sm:$0xff] }
 0x28c   :  { %517 = vrot.lane.b32.xlu0 %v438_v6, %s4865_s25  ;;  %v4377_v6 = vpack.c.bf16 %v645_v3, %v644_v2 }
 0x28d   :  { %v435_v0 = vpop.permute.xlu1 %434 }
 0x28e   :  { %v439_v8 = vmul.f32 %v435_v0, %v405_v43  ;;  %v647_v0 = vld [vmem:[#allocation3 + $0x18] sm:$0xff]  ;;  %4378 = vmatprep.subr.bf16.mxu1 %v4377_v6 }
 0x290   :  { %519 = vrot.lane.b32.xlu1 %v439_v8, %s4865_s25 }
 0x2fe   :  { %v518_v9 = vpop.permute.xlu0 %517 }
 0x2ff   :  { %4027 = vmatprep.mubr.msk.f32.mxu1 %vm317_vm4, %v518_v9  ;;  %4049 = vmatprep.mubr.msk.f32.mxu0 %vm317_vm4, %v518_v9 }
 0x302   :  { %v520_v10 = vpop.permute.xlu1 %519 }
 0x303   :  { %4028 = vmatmul.mubr.msk.f32.vlgmr.msra.gmra.mrb[0].mxu1 %vm317_vm4, %v520_v10  ;;  %4050 = vmatmul.mubr.msk.f32.vlgmr.msra.gmra.mrb[2].mxu0 %vm317_vm4, %v520_v10 }
 0x304   :  { %4420 = vmatpush3.bf16.msra.mxu0 %v4949_v7  ;;  %4380 = vmatpush3.bf16.msra.mxu1 %v4377_v6 }
 0x305   :  { %4422 = vmatprep.subr.bf16.mxu0 %v4964_v12 }
 0x308   :  { %4424 = vmatpush3.bf16.msra.mxu0 %v4964_v12 }
 0x309   :  { %4450 = vmatprep.subr.bf16.mxu0 %v4949_v7 }
 0x3d6   :  { %v4029_v13 = vpop.f32.mrb[0].mxu1  ;;  %v4051_v14 = vpop.f32.mrb[2].mxu0 }
 0x3d7   :  { %v601_v15 = vadd.f32 %v4029_v13, %v5113_v11  ;;  %v4611_v16 = vadd.f32 %v4051_v14, %v5033_v28  ;;  %v591_v17 = vpop.f32.mrb[1].mxu1  ;;  %v804_v18 = vpop.f32.mrb[3].mxu0 }
 0x3d8   :  { %v600_v19 = vadd.f32 %v5113_v11, %v591_v17  ;;  %v4612_v20 = vadd.f32 %v5033_v28, %v804_v18 }
 0x3d9   :  { %v603_v21 = vmul.f32 %v601_v15, %v5035_v30  ;;  %v816_v22 = vmul.f32 %v4611_v16, %v5035_v30 }
 0x3da   :  { %v602_v23 = vmul.f32 %v600_v19, %v5035_v30  ;;  %v815_v24 = vmul.f32 %v4612_v20, %v5035_v30 }
 0x3db   :  { %4689 = vtanh.f32 %v603_v21 }
 0x3dc   :  { %4691 = vtanh.f32 %v816_v22 }
 0x3dd   :  { %4693 = vtanh.f32 %v602_v23 }
 0x3de   :  { %4695 = vtanh.f32 %v815_v24 }
 0x3e5   :  { %v4690_v25 = vpop.eup %4689 }
 0x3e6   :  { %v4692_v26 = vpop.eup %4691  ;;  %v607_v27 = vmul.f32 %v4690_v25, %v5035_v30 }
 0x3e7   :  { %v4694_v29 = vpop.eup %4693  ;;  %v820_v34 = vmul.f32 %v4692_v26, %v5035_v30 }
 0x3e8   :  { %v4696_v31 = vpop.eup %4695  ;;  %v609_v32 = vadd.f32 %v607_v27, %v5041_v39  ;;  %v606_v33 = vmul.f32 %v4694_v29, %v5035_v30 }
 0x3e9   :  { %v819_v36 = vmul.f32 %v4696_v31, %v5035_v30  ;;  %v822_v37 = vadd.f32 %v820_v34, %v5041_v39 }
 0x3ea   :  { %616 = vrot.lane.b32.xlu1 %v609_v32, %s4864_s24  ;;  %v608_v35 = vadd.f32 %v606_v33, %v5041_v39  ;;  %v611_v48 = vmul.f32 0.0, %v609_v32 }
 0x3eb   :  { %v821_v38 = vadd.f32 %v819_v36, %v5041_v39  ;;  %v824_v56 = vmul.f32 %v822_v37, %v5054_v53  ;;  %v4381_v53 = vpack.c.bf16 %v647_v0, %v646_v5 }
 0x3ec   :  { %614 = vrot.lane.b32.xlu0 %v608_v35, %s4864_s24  ;;  %v610_v52 = vmul.f32 0.0, %v608_v35 }
 0x3ed   :  { %v823_v61 = vmul.f32 %v821_v38, %v5051_v50  ;;  %4382 = vmatprep.subr.bf16.mxu1 %v4381_v53 }
 0x3ee   :  { %829 = vrot.lane.b32.xlu1 %v822_v37, %s4864_s24  ;;  %4384 = vmatpush3.bf16.msra.mxu1 %v4381_v53 }
 0x3ef   :  { %4394 = vmatprep.subr.bf16.mxu1 %v5066_v57 }
 0x3f0   :  { %827 = vrot.lane.b32.xlu0 %v821_v38, %s4864_s24 }
 0x45c   :  { %v617_v40 = vpop.permute.xlu1 %616 }
 0x45d   :  { %v621_v41 = vmul.f32 %v617_v40, %v609_v32 }
 0x45e   :  { %v615_v42 = vpop.permute.xlu0 %614 }
 0x45f   :  { %v620_v43 = vmul.f32 %v615_v42, %v608_v35  ;;  %626 = vrot.lane.b32.xlu1 %v621_v41, %s4865_s25 }
 0x460   :  { %v830_v44 = vpop.permute.xlu1 %829 }
 0x461   :  { %v834_v45 = vmul.f32 %v830_v44, %v822_v37  ;;  %624 = vrot.lane.b32.xlu0 %v620_v43, %s4865_s25 }
 0x462   :  { %v828_v46 = vpop.permute.xlu0 %827 }
 0x463   :  { %v833_v47 = vmul.f32 %v828_v46, %v821_v38  ;;  %839 = vrot.lane.b32.xlu1 %v834_v45, %s4865_s25 }
 0x465   :  { %837 = vrot.lane.b32.xlu0 %v833_v47, %s4865_s25 }
 0x4d1   :  { %v627_v49 = vpop.permute.xlu1 %626 }
 0x4d2   :  { %v5139_v51 = vadd.f32 %v627_v49, %v611_v48 }
 0x4d3   :  { %v625_v54 = vpop.permute.xlu0 %624 }
 0x4d4   :  { %4697 = vtanh.f32 %v5139_v51  ;;  %v5142_v55 = vadd.f32 %v625_v54, %v610_v52 }
 0x4d5   :  { %v840_v58 = vpop.permute.xlu1 %839 }
 0x4d6   :  { %4699 = vtanh.f32 %v5142_v55  ;;  %v5146_v60 = vadd.f32 %v840_v58, %v824_v56 }
 0x4d7   :  { %v838_v63 = vpop.permute.xlu0 %837 }
 0x4d8   :  { %4701 = vtanh.f32 %v5146_v60  ;;  %v5150_v1 = vadd.f32 %v838_v63, %v823_v61 }
 0x4da   :  { %4703 = vtanh.f32 %v5150_v1 }
 0x4de   :  { %v4698_v8 = vpop.eup %4697 }
 0x4df   :  { %638 = vrot.lane.b32.xlu1 %v4698_v8, %s4864_s24 }
 0x4e0   :  { %v4700_v50 = vpop.eup %4699 }
 0x4e1   :  { %636 = vrot.lane.b32.xlu0 %v4700_v50, %s4864_s24 }
 0x4e2   :  { %v4702_v9 = vpop.eup %4701 }
 0x4e3   :  { %851 = vrot.lane.b32.xlu1 %v4702_v9, %s4864_s24 }
 0x4e4   :  { %v4704_v10 = vpop.eup %4703 }
 0x4e5   :  { %849 = vrot.lane.b32.xlu0 %v4704_v10, %s4864_s24 }
 0x551   :  { %v639_v13 = vpop.permute.xlu1 %638 }
 0x552   :  { %v643_v14 = vmul.f32 %v639_v13, %v609_v32 }
 0x553   :  { %v637_v15 = vpop.permute.xlu0 %636 }
 0x554   :  { %v642_v16 = vmul.f32 %v637_v15, %v608_v35  ;;  %652 = vrot.lane.b32.xlu1 %v643_v14, %s4865_s25 }
 0x555   :  { %v852_v17 = vpop.permute.xlu1 %851 }
 0x556   :  { %v856_v18 = vmul.f32 %v852_v17, %v822_v37  ;;  %650 = vrot.lane.b32.xlu0 %v642_v16, %s4865_s25 }
 0x557   :  { %v850_v19 = vpop.permute.xlu0 %849 }
 0x558   :  { %v855_v20 = vmul.f32 %v850_v19, %v821_v38  ;;  %936 = vrot.lane.b32.xlu1 %v856_v18, %s4865_s25  ;;  %v1063_v18 = vld [vmem:[#allocation3 + $0x28] sm:$0xff]  ;;  %v1064_v19 = vld [vmem:[#allocation3 + $0x30] sm:$0xff] }
 0x55a   :  { %934 = vrot.lane.b32.xlu0 %v855_v20, %s4865_s25 }
 0x5c6   :  { %v653_v21 = vpop.permute.xlu1 %652 }
 0x5c8   :  { %v651_v22 = vpop.permute.xlu0 %650 }
 0x5c9   :  { %4038 = vmatprep.mubr.msk.f32.mxu1 %vm317_vm4, %v651_v22 }
 0x5ca   :  { %4039 = vmatmul.mubr.msk.f32.vlgmr.msra.gmra.mrb[2].mxu1 %vm317_vm4, %v653_v21  ;;  %v937_v24 = vpop.permute.xlu1 %936 }
 0x5cb   :  { %4396 = vmatpush3.bf16.msra.mxu1 %v5066_v57  ;;  %4060 = vmatprep.mubr.msk.f32.mxu1 %vm317_vm4, %v651_v22 }
 0x5cc   :  { %v935_v23 = vpop.permute.xlu0 %934  ;;  %4398 = vmatprep.subr.bf16.mxu1 %v5071_v59 }
 0x5cd   :  { %4093 = vmatprep.mubr.msk.f32.mxu0 %vm317_vm4, %v935_v23 }
 0x5ce   :  { %4094 = vmatmul.mubr.msk.f32.vlgmr.msra.gmra.mrb[4].mxu0 %vm317_vm4, %v937_v24 }
 0x5cf   :  { %4400 = vmatpush3.bf16.msra.mxu1 %v5071_v59  ;;  %4452 = vmatpush3.bf16.msra.mxu0 %v4949_v7 }
 0x5d0   :  { %4402 = vmatprep.subr.bf16.mxu1 %v5082_v62  ;;  %4454 = vmatprep.subr.bf16.mxu0 %v4964_v12 }
 0x5d2   :  { %4061 = vmatmul.mubr.msk.f32.vlgmr.msra.gmra.mrb[4].mxu1 %vm317_vm4, %v653_v21  ;;  %v1065_v21 = vld [vmem:[#allocation3 + $0x38] sm:$0xff] }
 0x5d3   :  { %4404 = vmatpush3.bf16.msra.mxu1 %v5082_v62  ;;  %4071 = vmatprep.mubr.msk.f32.mxu1 %vm317_vm4, %v935_v23 }
 0x5d4   :  { %4406 = vmatprep.subr.bf16.mxu1 %v5096_v4  ;;  %4456 = vmatpush3.bf16.msra.mxu0 %v4964_v12 }
 0x5d5   :  { %4458 = vmatprep.subr.bf16.mxu0 %v5066_v57 }
 0x5d7   :  { %4408 = vmatpush3.bf16.msra.mxu1 %v5096_v4 }
 0x5da   :  { %4072 = vmatmul.mubr.msk.f32.vlgmr.msra.gmra.mrb[4].mxu1 %vm317_vm4, %v937_v24 }
 0x6a1   :  { %v4095_v25 = vpop.f32.mrb[4].mxu0 }
 0x6a2   :  { %v1222_v26 = vpop.f32.mrb[5].mxu0  ;;  %v4613_v27 = vadd.f32 %v4095_v25, %v5033_v28 }
 0x6a3   :  { %v4614_v29 = vadd.f32 %v5033_v28, %v1222_v26 }
 0x6a4   :  { %v1234_v31 = vmul.f32 %v4613_v27, %v5035_v30 }
 0x6a5   :  { %v1233_v32 = vmul.f32 %v4614_v29, %v5035_v30 }
 0x6a6   :  { %4705 = vtanh.f32 %v1234_v31 }
 0x6a7   :  { %4707 = vtanh.f32 %v1233_v32 }
 0x6ad   :  { %v4073_v33 = vpop.f32.mrb[4].mxu1 }
 0x6ae   :  { %v1018_v34 = vadd.f32 %v4073_v33, %v5113_v11  ;;  %v1008_v35 = vpop.f32.mrb[5].mxu1 }
 0x6af   :  { %v1017_v36 = vadd.f32 %v5113_v11, %v1008_v35 }
 0x6b0   :  { %v1020_v37 = vmul.f32 %v1018_v34, %v5035_v30  ;;  %v4706_v40 = vpop.eup %4705 }
 0x6b1   :  { %v1019_v38 = vmul.f32 %v1017_v36, %v5035_v30  ;;  %v4708_v41 = vpop.eup %4707  ;;  %v1238_v47 = vmul.f32 %v4706_v40, %v5035_v30 }
 0x6b2   :  { %4709 = vtanh.f32 %v1020_v37  ;;  %v1237_v49 = vmul.f32 %v4708_v41, %v5035_v30 }
 0x6b3   :  { %4711 = vtanh.f32 %v1019_v38  ;;  %v1240_v52 = vadd.f32 %v1238_v47, %v5041_v39 }
 0x6b4   :  { %v1239_v54 = vadd.f32 %v1237_v49, %v5041_v39 }
 0x6b5   :  { %v1242_v13 = vmul.f32 %v1240_v52, %v5146_v60  ;;  %v4413_v60 = vpack.c.bf16 %v1065_v21, %v1064_v19 }
 0x6b6   :  { %v1241_v15 = vmul.f32 %v1239_v54, %v5150_v1 }
 0x6bc   :  { %v4710_v42 = vpop.eup %4709 }
 0x6bd   :  { %v4712_v43 = vpop.eup %4711  ;;  %v1024_v44 = vmul.f32 %v4710_v42, %v5035_v30 }
 0x6be   :  { %v1023_v45 = vmul.f32 %v4712_v43, %v5035_v30 }
 0x6bf   :  { %v1026_v46 = vadd.f32 %v1024_v44, %v5041_v39 }
 0x6c0   :  { %v1025_v48 = vadd.f32 %v1023_v45, %v5041_v39 }
 0x6c1   :  { %1033 = vrot.lane.b32.xlu1 %v1026_v46, %s4864_s24  ;;  %v1028_v0 = vmul.f32 %v1026_v46, %v5139_v51 }
 0x6c2   :  { %1031 = vrot.lane.b32.xlu0 %v1025_v48, %s4864_s24  ;;  %v1027_v8 = vmul.f32 %v1025_v48, %v5142_v55  ;;  %v1062_v55 = vld [vmem:[#allocation3 + $0x20] sm:$0xff] }
 0x6c3   :  { %v4409_v20 = vpack.c.bf16 %v1063_v18, %v1062_v55 }
 0x6c5   :  { %1247 = vrot.lane.b32.xlu1 %v1240_v52, %s4864_s24  ;;  %4410 = vmatprep.subr.bf16.mxu1 %v4409_v20 }
 0x6c6   :  { %1245 = vrot.lane.b32.xlu0 %v1239_v54, %s4864_s24  ;;  %4412 = vmatpush3.bf16.msra.mxu1 %v4409_v20 }
 0x6c7   :  { %4414 = vmatprep.subr.bf16.mxu1 %v4413_v60 }
 0x6ca   :  { %4416 = vmatpush3.bf16.msra.mxu1 %v4413_v60 }
 0x6cb   :  { %4426 = vmatprep.subr.bf16.mxu1 %v5066_v57 }
 0x733   :  { %v1034_v56 = vpop.permute.xlu1 %1033 }
 0x734   :  { %v1038_v58 = vmul.f32 %v1034_v56, %v1026_v46  ;;  %v1032_v61 = vpop.permute.xlu0 %1031 }
 0x735   :  { %v1037_v63 = vmul.f32 %v1032_v61, %v1025_v48 }
 0x736   :  { %1043 = vrot.lane.b32.xlu1 %v1038_v58, %s4865_s25 }
 0x737   :  { %v1248_v2 = vpop.permute.xlu1 %1247  ;;  %1041 = vrot.lane.b32.xlu0 %v1037_v63, %s4865_s25 }
 0x738   :  { %v1252_v3 = vmul.f32 %v1248_v2, %v1240_v52  ;;  %v1246_v5 = vpop.permute.xlu0 %1245 }
 0x739   :  { %v1251_v6 = vmul.f32 %v1246_v5, %v1239_v54 }
 0x73a   :  { %1257 = vrot.lane.b32.xlu1 %v1252_v3, %s4865_s25 }
 0x73b   :  { %1255 = vrot.lane.b32.xlu0 %v1251_v6, %s4865_s25 }
 0x7a8   :  { %v1044_v53 = vpop.permute.xlu1 %1043 }
 0x7a9   :  { %v5207_v50 = vadd.f32 %v1044_v53, %v1028_v0  ;;  %v1042_v9 = vpop.permute.xlu0 %1041 }
 0x7aa   :  { %v5209_v10 = vadd.f32 %v1042_v9, %v1027_v8 }
 0x7ab   :  { %4713 = vtanh.f32 %v5207_v50 }
 0x7ac   :  { %4715 = vtanh.f32 %v5209_v10  ;;  %v1258_v14 = vpop.permute.xlu1 %1257 }
 0x7ad   :  { %v5215_v16 = vadd.f32 %v1258_v14, %v1242_v13  ;;  %v1256_v51 = vpop.permute.xlu0 %1255 }
 0x7ae   :  { %v5217_v17 = vadd.f32 %v1256_v51, %v1241_v15 }
 0x7af   :  { %4717 = vtanh.f32 %v5215_v16 }
 0x7b0   :  { %4719 = vtanh.f32 %v5217_v17 }
 0x7b5   :  { %v4714_v22 = vpop.eup %4713 }
 0x7b6   :  { %v4716_v1 = vpop.eup %4715  ;;  %1055 = vrot.lane.b32.xlu1 %v4714_v22, %s4864_s24 }
 0x7b7   :  { %1053 = vrot.lane.b32.xlu0 %v4716_v1, %s4864_s24 }
 0x7b9   :  { %v4718_v23 = vpop.eup %4717 }
 0x7ba   :  { %v4720_v24 = vpop.eup %4719  ;;  %1269 = vrot.lane.b32.xlu1 %v4718_v23, %s4864_s24 }
 0x7bb   :  { %1267 = vrot.lane.b32.xlu0 %v4720_v24, %s4864_s24 }
 0x828   :  { %v1056_v25 = vpop.permute.xlu1 %1055 }
 0x829   :  { %v1060_v26 = vmul.f32 %v1056_v25, %v1026_v46  ;;  %v1054_v27 = vpop.permute.xlu0 %1053 }
 0x82a   :  { %v1059_v29 = vmul.f32 %v1054_v27, %v1025_v48 }
 0x82b   :  { %1070 = vrot.lane.b32.xlu1 %v1060_v26, %s4865_s25 }
 0x82c   :  { %v1270_v31 = vpop.permute.xlu1 %1269  ;;  %1068 = vrot.lane.b32.xlu0 %v1059_v29, %s4865_s25 }
 0x82d   :  { %v1274_v32 = vmul.f32 %v1270_v31, %v1240_v52  ;;  %v1268_v33 = vpop.permute.xlu0 %1267 }
 0x82e   :  { %v1273_v34 = vmul.f32 %v1268_v33, %v1239_v54  ;;  %v1482_v33 = vld [vmem:[#allocation3 + $0x50] sm:$0xff] }
 0x82f   :  { %1354 = vrot.lane.b32.xlu1 %v1274_v32, %s4865_s25  ;;  %v1481_v32 = vld [vmem:[#allocation3 + $0x48] sm:$0xff] }
 0x830   :  { %1352 = vrot.lane.b32.xlu0 %v1273_v34, %s4865_s25 }
 0x89d   :  { %v1071_v35 = vpop.permute.xlu1 %1070 }
 0x89e   :  { %v1069_v36 = vpop.permute.xlu0 %1068 }
 0x89f   :  { %4082 = vmatprep.mubr.msk.f32.mxu1 %vm317_vm4, %v1069_v36 }
 0x8a0   :  { %4083 = vmatmul.mubr.msk.f32.vlgmr.msra.gmra.mrb[2].mxu1 %vm317_vm4, %v1071_v35 }
 0x8a1   :  { %4428 = vmatpush3.bf16.msra.mxu1 %v5066_v57  ;;  %4104 = vmatprep.mubr.msk.f32.mxu1 %vm317_vm4, %v1069_v36  ;;  %v1355_v38 = vpop.permute.xlu1 %1354 }
 0x8a2   :  { %v1353_v37 = vpop.permute.xlu0 %1352  ;;  %4430 = vmatprep.subr.bf16.mxu1 %v5071_v59 }
 0x8a3   :  { %4137 = vmatprep.mubr.msk.f32.mxu0 %vm317_vm4, %v1353_v37 }
 0x8a4   :  { %4138 = vmatmul.mubr.msk.f32.vlgmr.msra.gmra.mrb[6].mxu0 %vm317_vm4, %v1355_v38 }
 0x8a5   :  { %4432 = vmatpush3.bf16.msra.mxu1 %v5071_v59  ;;  %4460 = vmatpush3.bf16.msra.mxu0 %v5066_v57 }
 0x8a6   :  { %4434 = vmatprep.subr.bf16.mxu1 %v5082_v62  ;;  %4462 = vmatprep.subr.bf16.mxu0 %v5071_v59 }
 0x8a8   :  { %4105 = vmatmul.mubr.msk.f32.vlgmr.msra.gmra.mrb[6].mxu1 %vm317_vm4, %v1071_v35  ;;  %v1483_v35 = vld [vmem:[#allocation3 + $0x58] sm:$0xff] }
 0x8a9   :  { %4436 = vmatpush3.bf16.msra.mxu1 %v5082_v62  ;;  %4115 = vmatprep.mubr.msk.f32.mxu1 %vm317_vm4, %v1353_v37 }
 0x8aa   :  { %4438 = vmatprep.subr.bf16.mxu1 %v5096_v4  ;;  %4464 = vmatpush3.bf16.msra.mxu0 %v5071_v59 }
 0x8ab   :  { %4466 = vmatprep.subr.bf16.mxu0 %v5082_v62 }
 0x8ad   :  { %4440 = vmatpush3.bf16.msra.mxu1 %v5096_v4 }
 0x8b0   :  { %4116 = vmatmul.mubr.msk.f32.vlgmr.msra.gmra.mrb[6].mxu1 %vm317_vm4, %v1355_v38 }
 0x977   :  { %v4139_v40 = vpop.f32.mrb[6].mxu0 }
 0x978   :  { %v1640_v41 = vpop.f32.mrb[7].mxu0  ;;  %v4615_v42 = vadd.f32 %v4139_v40, %v5033_v28 }
 0x979   :  { %v4616_v43 = vadd.f32 %v5033_v28, %v1640_v41 }
 0x97a   :  { %v1652_v44 = vmul.f32 %v4615_v42, %v5035_v30 }
 0x97b   :  { %v1651_v45 = vmul.f32 %v4616_v43, %v5035_v30 }
 0x97c   :  { %4721 = vtanh.f32 %v1652_v44 }
 0x97d   :  { %4723 = vtanh.f32 %v1651_v45 }
 0x983   :  { %v4117_v46 = vpop.f32.mrb[6].mxu1 }
 0x984   :  { %v1436_v47 = vadd.f32 %v4117_v46, %v5113_v11  ;;  %v1426_v48 = vpop.f32.mrb[7].mxu1 }
 0x985   :  { %v1435_v49 = vadd.f32 %v5113_v11, %v1426_v48 }
 0x986   :  { %v1438_v52 = vmul.f32 %v1436_v47, %v5035_v30  ;;  %v4722_v56 = vpop.eup %4721 }
 0x987   :  { %v1437_v54 = vmul.f32 %v1435_v49, %v5035_v30  ;;  %v4724_v58 = vpop.eup %4723  ;;  %v1656_v6 = vmul.f32 %v4722_v56, %v5035_v30 }
 0x988   :  { %4725 = vtanh.f32 %v1438_v52  ;;  %v1655_v53 = vmul.f32 %v4724_v58, %v5035_v30 }
 0x989   :  { %4727 = vtanh.f32 %v1437_v54  ;;  %v1658_v8 = vadd.f32 %v1656_v6, %v5041_v39 }
 0x98a   :  { %v1657_v9 = vadd.f32 %v1655_v53, %v5041_v39 }
 0x98b   :  { %v1660_v25 = vmul.f32 %v1658_v8, %v5215_v16  ;;  %v4445_v16 = vpack.c.bf16 %v1483_v35, %v1482_v33 }
 0x98c   :  { %v1659_v27 = vmul.f32 %v1657_v9, %v5217_v17 }
 0x992   :  { %v4726_v61 = vpop.eup %4725 }
 0x993   :  { %v4728_v63 = vpop.eup %4727  ;;  %v1442_v2 = vmul.f32 %v4726_v61, %v5035_v30 }
 0x994   :  { %v1441_v3 = vmul.f32 %v4728_v63, %v5035_v30 }
 0x995   :  { %v1444_v5 = vadd.f32 %v1442_v2, %v5041_v39 }
 0x996   :  { %v1443_v0 = vadd.f32 %v1441_v3, %v5041_v39 }
 0x997   :  { %1451 = vrot.lane.b32.xlu1 %v1444_v5, %s4864_s24  ;;  %v1446_v21 = vmul.f32 %v1444_v5, %v5207_v50 }
 0x998   :  { %1449 = vrot.lane.b32.xlu0 %v1443_v0, %s4864_s24  ;;  %v1445_v22 = vmul.f32 %v1443_v0, %v5209_v10  ;;  %v1480_v10 = vld [vmem:[#allocation3 + $0x40] sm:$0xff] }
 0x999   :  { %v4441_v34 = vpack.c.bf16 %v1481_v32, %v1480_v10 }
 0x99b   :  { %1665 = vrot.lane.b32.xlu1 %v1658_v8, %s4864_s24  ;;  %4442 = vmatprep.subr.bf16.mxu1 %v4441_v34 }
 0x99c   :  { %1663 = vrot.lane.b32.xlu0 %v1657_v9, %s4864_s24  ;;  %4444 = vmatpush3.bf16.msra.mxu1 %v4441_v34 }
 0x99d   :  { %4446 = vmatprep.subr.bf16.mxu1 %v4445_v16 }
 0x9a0   :  { %4448 = vmatpush3.bf16.msra.mxu1 %v4445_v16 }
 0xa09   :  { %v1452_v13 = vpop.permute.xlu1 %1451 }
 0xa0a   :  { %v1456_v14 = vmul.f32 %v1452_v13, %v1444_v5  ;;  %v1450_v15 = vpop.permute.xlu0 %1449 }
 0xa0b   :  { %v1455_v51 = vmul.f32 %v1450_v15, %v1443_v0 }
 0xa0c   :  { %1461 = vrot.lane.b32.xlu1 %v1456_v14, %s4865_s25 }
 0xa0d   :  { %v1666_v55 = vpop.permute.xlu1 %1665  ;;  %1459 = vrot.lane.b32.xlu0 %v1455_v51, %s4865_s25 }
 0xa0e   :  { %v1670_v18 = vmul.f32 %v1666_v55, %v1658_v8  ;;  %v1664_v19 = vpop.permute.xlu0 %1663 }
 0xa0f   :  { %v1669_v20 = vmul.f32 %v1664_v19, %v1657_v9 }
 0xa10   :  { %1675 = vrot.lane.b32.xlu1 %v1670_v18, %s4865_s25 }
 0xa11   :  { %1673 = vrot.lane.b32.xlu0 %v1669_v20, %s4865_s25 }
 0xa7e   :  { %v1462_v60 = vpop.permute.xlu1 %1461 }
 0xa7f   :  { %v5275_v1 = vadd.f32 %v1462_v60, %v1446_v21  ;;  %v1460_v23 = vpop.permute.xlu0 %1459 }
 0xa80   :  { %v5277_v24 = vadd.f32 %v1460_v23, %v1445_v22 }
 0xa81   :  { %4729 = vtanh.f32 %v5275_v1 }
 0xa82   :  { %4731 = vtanh.f32 %v5277_v24  ;;  %v1676_v26 = vpop.permute.xlu1 %1675 }
 0xa83   :  { %v5283_v29 = vadd.f32 %v1676_v26, %v1660_v25  ;;  %v1674_v50 = vpop.permute.xlu0 %1673 }
 0xa84   :  { %v5285_v31 = vadd.f32 %v1674_v50, %v1659_v27 }
 0xa85   :  { %4733 = vtanh.f32 %v5283_v29 }
 0xa86   :  { %4735 = vtanh.f32 %v5285_v31 }
 0xa8b   :  { %v4730_v36 = vpop.eup %4729 }
 0xa8c   :  { %v4732_v17 = vpop.eup %4731  ;;  %1473 = vrot.lane.b32.xlu1 %v4730_v36, %s4864_s24 }
 0xa8d   :  { %1471 = vrot.lane.b32.xlu0 %v4732_v17, %s4864_s24 }
 0xa8f   :  { %v4734_v37 = vpop.eup %4733 }
 0xa90   :  { %v4736_v38 = vpop.eup %4735  ;;  %1687 = vrot.lane.b32.xlu1 %v4734_v37, %s4864_s24 }
 0xa91   :  { %1685 = vrot.lane.b32.xlu0 %v4736_v38, %s4864_s24 }
 0xafe   :  { %v1474_v40 = vpop.permute.xlu1 %1473 }
 0xaff   :  { %v1478_v41 = vmul.f32 %v1474_v40, %v1444_v5  ;;  %v1472_v42 = vpop.permute.xlu0 %1471 }
 0xb00   :  { %v1477_v43 = vmul.f32 %v1472_v42, %v1443_v0 }
 0xb01   :  { %1488 = vrot.lane.b32.xlu1 %v1478_v41, %s4865_s25 }
 0xb02   :  { %v1688_v44 = vpop.permute.xlu1 %1687  ;;  %1486 = vrot.lane.b32.xlu0 %v1477_v43, %s4865_s25 }
 0xb03   :  { %v1692_v45 = vmul.f32 %v1688_v44, %v1658_v8  ;;  %v1686_v46 = vpop.permute.xlu0 %1685  ;;  %v1899_v44 = vld [vmem:[#allocation3 + $0x68] sm:$0xff] }
 0xb04   :  { %v1691_v47 = vmul.f32 %v1686_v46, %v1657_v9 }
 0xb05   :  { %1772 = vrot.lane.b32.xlu1 %v1692_v45, %s4865_s25  ;;  %v1900_v45 = vld [vmem:[#allocation3 + $0x70] sm:$0xff] }
 0xb06   :  { %1770 = vrot.lane.b32.xlu0 %v1691_v47, %s4865_s25 }
 0xb73   :  { %v1489_v49 = vpop.permute.xlu1 %1488 }
 0xb74   :  { %v1487_v48 = vpop.permute.xlu0 %1486 }
 0xb75   :  { %4126 = vmatprep.mubr.msk.f32.mxu1 %vm317_vm4, %v1487_v48  ;;  %4148 = vmatprep.mubr.msk.f32.mxu0 %vm317_vm4, %v1487_v48  ;;  %v1901_v48 = vld [vmem:[#allocation3 + $0x78] sm:$0xff] }
 0xb76   :  { %4127 = vmatmul.mubr.msk.f32.vlgmr.msra.gmra.mrb[2].mxu1 %vm317_vm4, %v1489_v49  ;;  %4149 = vmatmul.mubr.msk.f32.vlgmr.msra.gmra.mrb[16].mxu0 %vm317_vm4, %v1489_v49 }
 0xb77   :  { %4468 = vmatpush3.bf16.msra.mxu0 %v5082_v62  ;;  %v1773_v54 = vpop.permute.xlu1 %1772 }
 0xb78   :  { %v1771_v52 = vpop.permute.xlu0 %1770  ;;  %4470 = vmatprep.subr.bf16.mxu0 %v5096_v4 }
 0xb79   :  { %4159 = vmatprep.mubr.msk.f32.mxu0 %vm317_vm4, %v1771_v52 }
 0xb7b   :  { %4472 = vmatpush3.bf16.msra.mxu0 %v5096_v4 }
 0xb7c   :  { %4482 = vmatprep.subr.bf16.mxu0 %v4949_v7 }
 0xb7e   :  { %4160 = vmatmul.mubr.msk.f32.vlgmr.msra.gmra.mrb[16].mxu0 %vm317_vm4, %v1773_v54 }
 0xb7f   :  { %4484 = vmatpush3.bf16.msra.mxu0 %v4949_v7  ;;  %4181 = vmatprep.mubr.msk.f32.mxu0 %vm317_vm4, %v1771_v52 }
 0xb80   :  { %4486 = vmatprep.subr.bf16.mxu0 %v4964_v12 }
 0xb83   :  { %4488 = vmatpush3.bf16.msra.mxu0 %v4964_v12 }
 0xb84   :  { %4514 = vmatprep.subr.bf16.mxu0 %v4949_v7 }
 0xb86   :  { %4182 = vmatmul.mubr.msk.f32.vlgmr.msra.gmra.mrb[8].mxu0 %vm317_vm4, %v1773_v54 }
 0xb87   :  { %4516 = vmatpush3.bf16.msra.mxu0 %v4949_v7 }
 0xb88   :  { %4518 = vmatprep.subr.bf16.mxu0 %v4964_v12 }
 0xb8b   :  { %4520 = vmatpush3.bf16.msra.mxu0 %v4964_v12 }
 0xb8c   :  { %4522 = vmatprep.subr.bf16.mxu0 %v5066_v57 }
 0xc51   :  { %v4161_v56 = vpop.f32.mrb[16].mxu0 }
 0xc52   :  { %v1854_v58 = vadd.f32 %v4161_v56, %v5113_v11  ;;  %v1844_v61 = vpop.f32.mrb[17].mxu0 }
 0xc53   :  { %v1853_v63 = vadd.f32 %v5113_v11, %v1844_v61 }
 0xc54   :  { %v1856_v2 = vmul.f32 %v1854_v58, %v5035_v30 }
 0xc55   :  { %v1855_v3 = vmul.f32 %v1853_v63, %v5035_v30 }
 0xc56   :  { %4737 = vtanh.f32 %v1856_v2 }
 0xc57   :  { %4739 = vtanh.f32 %v1855_v3 }
 0xc59   :  { %v4183_v5 = vpop.f32.mrb[8].mxu0 }
 0xc5a   :  { %v4617_v6 = vadd.f32 %v4183_v5, %v5033_v28  ;;  %v2058_v0 = vpop.f32.mrb[9].mxu0 }
 0xc5b   :  { %v4618_v53 = vadd.f32 %v5033_v28, %v2058_v0 }
 0xc5c   :  { %v2070_v8 = vmul.f32 %v4617_v6, %v5035_v30 }
 0xc5d   :  { %v2069_v9 = vmul.f32 %v4618_v53, %v5035_v30 }
 0xc5e   :  { %4741 = vtanh.f32 %v2070_v8 }
 0xc5f   :  { %4743 = vtanh.f32 %v2069_v9 }
 0xc60   :  { %v4738_v13 = vpop.eup %4737 }
 0xc61   :  { %v4740_v14 = vpop.eup %4739  ;;  %v1860_v15 = vmul.f32 %v4738_v13, %v5035_v30 }
 0xc62   :  { %v1859_v51 = vmul.f32 %v4740_v14, %v5035_v30  ;;  %v5388_v14 = vld [vmem:[%s5623_s3] ss:$0 sm:$0xff] }
 0xc63   :  { %v1862_v55 = vadd.f32 %v1860_v15, %v5041_v39 }
 0xc64   :  { %v1861_v18 = vadd.f32 %v1859_v51, %v5041_v39 }
 0xc65   :  { %1869 = vrot.lane.b32.xlu1 %v1862_v55, %s4864_s24  ;;  %v1864_v34 = vmul.f32 %v1862_v55, %v5275_v1 }
 0xc66   :  { %1867 = vrot.lane.b32.xlu0 %v1861_v18, %s4864_s24  ;;  %v1863_v16 = vmul.f32 %v1861_v18, %v5277_v24  ;;  %v1898_v24 = vld [vmem:[#allocation3 + $0x60] sm:$0xff] }
 0xc67   :  { %v4473_v47 = vpack.c.bf16 %v1899_v44, %v1898_v24 }
 0xc68   :  { %v4742_v28 = vpop.eup %4741 }
 0xc69   :  { %v4744_v19 = vpop.eup %4743  ;;  %v2074_v20 = vmul.f32 %v4742_v28, %v5035_v30  ;;  %4474 = vmatprep.subr.bf16.mxu1 %v4473_v47 }
 0xc6a   :  { %v2073_v21 = vmul.f32 %v4744_v19, %v5035_v30  ;;  %4476 = vmatpush3.bf16.msra.mxu1 %v4473_v47 }
 0xc6b   :  { %v2076_v60 = vadd.f32 %v2074_v20, %v5041_v39 }
 0xc6c   :  { %v2075_v22 = vadd.f32 %v2073_v21, %v5041_v39 }
 0xc6d   :  { %2083 = vrot.lane.b32.xlu1 %v2076_v60, %s4864_s24  ;;  %v2078_v38 = vmul.f32 %v2076_v60, %v5283_v29  ;;  %v4477_v29 = vpack.c.bf16 %v1901_v48, %v1900_v45 }
 0xc6e   :  { %2081 = vrot.lane.b32.xlu0 %v2075_v22, %s4864_s24  ;;  %v2077_v41 = vmul.f32 %v2075_v22, %v5285_v31 }
 0xc6f   :  { %4478 = vmatprep.subr.bf16.mxu1 %v4477_v29 }
 0xc70   :  { %4480 = vmatpush3.bf16.msra.mxu1 %v4477_v29 }
 0xc71   :  { %4490 = vmatprep.subr.bf16.mxu1 %v5066_v57 }
 0xcd7   :  { %v1870_v23 = vpop.permute.xlu1 %1869 }
 0xcd8   :  { %v1874_v25 = vmul.f32 %v1870_v23, %v1862_v55  ;;  %v1868_v26 = vpop.permute.xlu0 %1867 }
 0xcd9   :  { %v1873_v27 = vmul.f32 %v1868_v26, %v1861_v18 }
 0xcda   :  { %1879 = vrot.lane.b32.xlu1 %v1874_v25, %s4865_s25 }
 0xcdb   :  { %1877 = vrot.lane.b32.xlu0 %v1873_v27, %s4865_s25 }
 0xcdf   :  { %v2084_v50 = vpop.permute.xlu1 %2083 }
 0xce0   :  { %v2088_v10 = vmul.f32 %v2084_v50, %v2076_v60  ;;  %v2082_v32 = vpop.permute.xlu0 %2081 }
 0xce1   :  { %v2087_v33 = vmul.f32 %v2082_v32, %v2075_v22 }
 0xce2   :  { %2093 = vrot.lane.b32.xlu1 %v2088_v10, %s4865_s25 }
 0xce3   :  { %2091 = vrot.lane.b32.xlu0 %v2087_v33, %s4865_s25 }
 0xd4c   :  { %v1880_v35 = vpop.permute.xlu1 %1879 }
 0xd4d   :  { %v5343_v36 = vadd.f32 %v1880_v35, %v1864_v34  ;;  %v1878_v17 = vpop.permute.xlu0 %1877 }
 0xd4e   :  { %v5345_v37 = vadd.f32 %v1878_v17, %v1863_v16 }
 0xd4f   :  { %4745 = vtanh.f32 %v5343_v36 }
 0xd50   :  { %4747 = vtanh.f32 %v5345_v37 }
 0xd54   :  { %v2094_v40 = vpop.permute.xlu1 %2093 }
 0xd55   :  { %v5351_v42 = vadd.f32 %v2094_v40, %v2078_v38  ;;  %v2092_v1 = vpop.permute.xlu0 %2091 }
 0xd56   :  { %v5353_v43 = vadd.f32 %v2092_v1, %v2077_v41 }
 0xd57   :  { %4749 = vtanh.f32 %v5351_v42 }
 0xd58   :  { %4751 = vtanh.f32 %v5353_v43 }
 0xd59   :  { %v4746_v46 = vpop.eup %4745 }
 0xd5a   :  { %v4748_v49 = vpop.eup %4747  ;;  %1891 = vrot.lane.b32.xlu1 %v4746_v46, %s4864_s24 }
 0xd5b   :  { %1889 = vrot.lane.b32.xlu0 %v4748_v49, %s4864_s24 }
 0xd61   :  { %v4750_v31 = vpop.eup %4749 }
 0xd62   :  { %v4752_v52 = vpop.eup %4751  ;;  %2105 = vrot.lane.b32.xlu1 %v4750_v31, %s4864_s24 }
 0xd63   :  { %2103 = vrot.lane.b32.xlu0 %v4752_v52, %s4864_s24 }
 0xdcc   :  { %v1892_v54 = vpop.permute.xlu1 %1891 }
 0xdcd   :  { %v1896_v56 = vmul.f32 %v1892_v54, %v1862_v55  ;;  %v1890_v58 = vpop.permute.xlu0 %1889 }
 0xdce   :  { %v1895_v61 = vmul.f32 %v1890_v58, %v1861_v18 }
 0xdcf   :  { %1906 = vrot.lane.b32.xlu1 %v1896_v56, %s4865_s25 }
 0xdd0   :  { %1904 = vrot.lane.b32.xlu0 %v1895_v61, %s4865_s25 }
 0xdd4   :  { %v2106_v63 = vpop.permute.xlu1 %2105 }
 0xdd5   :  { %v2110_v2 = vmul.f32 %v2106_v63, %v2076_v60  ;;  %v2104_v3 = vpop.permute.xlu0 %2103  ;;  %v2317_v63 = vld [vmem:[#allocation3 + $0x88] sm:$0xff] }
 0xdd6   :  { %v2109_v5 = vmul.f32 %v2104_v3, %v2075_v22 }
 0xdd7   :  { %2190 = vrot.lane.b32.xlu1 %v2110_v2, %s4865_s25  ;;  %v2318_v2 = vld [vmem:[#allocation3 + $0x90] sm:$0xff] }
 0xdd8   :  { %2188 = vrot.lane.b32.xlu0 %v2109_v5, %s4865_s25  ;;  %v2319_v5 = vld [vmem:[#allocation3 + $0x98] sm:$0xff] }
 0xe41   :  { %v1907_v0 = vpop.permute.xlu1 %1906 }
 0xe42   :  { %v1905_v6 = vpop.permute.xlu0 %1904 }
 0xe43   :  { %4170 = vmatprep.mubr.msk.f32.mxu1 %vm317_vm4, %v1905_v6 }
 0xe44   :  { %4171 = vmatmul.mubr.msk.f32.vlgmr.msra.gmra.mrb[2].mxu1 %vm317_vm4, %v1907_v0 }
 0xe45   :  { %4492 = vmatpush3.bf16.msra.mxu1 %v5066_v57  ;;  %4192 = vmatprep.mubr.msk.f32.mxu1 %vm317_vm4, %v1905_v6 }
 0xe46   :  { %4494 = vmatprep.subr.bf16.mxu1 %v5071_v59 }
 0xe49   :  { %4496 = vmatpush3.bf16.msra.mxu1 %v5071_v59  ;;  %v2191_v8 = vpop.permute.xlu1 %2190 }
 0xe4a   :  { %v2189_v53 = vpop.permute.xlu0 %2188  ;;  %4498 = vmatprep.subr.bf16.mxu1 %v5082_v62 }
 0xe4b   :  { %4225 = vmatprep.mubr.msk.f32.mxu0 %vm317_vm4, %v2189_v53 }
 0xe4c   :  { %4193 = vmatmul.mubr.msk.f32.vlgmr.msra.gmra.mrb[8].mxu1 %vm317_vm4, %v1907_v0  ;;  %4226 = vmatmul.mubr.msk.f32.vlgmr.msra.gmra.mrb[10].mxu0 %vm317_vm4, %v2191_v8 }
 0xe4d   :  { %4500 = vmatpush3.bf16.msra.mxu1 %v5082_v62  ;;  %4203 = vmatprep.mubr.msk.f32.mxu1 %vm317_vm4, %v2189_v53 }
 0xe4e   :  { %4502 = vmatprep.subr.bf16.mxu1 %v5096_v4  ;;  %4524 = vmatpush3.bf16.msra.mxu0 %v5066_v57 }
 0xe4f   :  { %4526 = vmatprep.subr.bf16.mxu0 %v5071_v59 }
 0xe51   :  { %4504 = vmatpush3.bf16.msra.mxu1 %v5096_v4 }
 0xe52   :  { %4528 = vmatpush3.bf16.msra.mxu0 %v5071_v59 }
 0xe53   :  { %4530 = vmatprep.subr.bf16.mxu0 %v5082_v62 }
 0xe54   :  { %4204 = vmatmul.mubr.msk.f32.vlgmr.msra.gmra.mrb[8].mxu1 %vm317_vm4, %v2191_v8 }
 0xf1f   :  { %v4227_v9 = vpop.f32.mrb[10].mxu0 }
 0xf20   :  { %v2476_v13 = vpop.f32.mrb[11].mxu0  ;;  %v4619_v15 = vadd.f32 %v5388_v14, %v4227_v9 }
 0xf21   :  { %v4620_v51 = vadd.f32 %v5388_v14, %v2476_v13 }
 0xf22   :  { %v2488_v55 = vmul.f32 %v4619_v15, %v5035_v30 }
 0xf23   :  { %v2487_v18 = vmul.f32 %v4620_v51, %v5035_v30 }
 0xf24   :  { %4753 = vtanh.f32 %v2488_v55 }
 0xf25   :  { %4755 = vtanh.f32 %v2487_v18 }
 0xf27   :  { %v4205_v28 = vpop.f32.mrb[8].mxu1 }
 0xf28   :  { %v2272_v19 = vadd.f32 %v4205_v28, %v5113_v11  ;;  %v2262_v20 = vpop.f32.mrb[9].mxu1 }
 0xf29   :  { %v2271_v21 = vadd.f32 %v5113_v11, %v2262_v20 }
 0xf2a   :  { %v2274_v60 = vmul.f32 %v2272_v19, %v5035_v30 }
 0xf2b   :  { %v2273_v22 = vmul.f32 %v2271_v21, %v5035_v30 }
 0xf2c   :  { %4757 = vtanh.f32 %v2274_v60 }
 0xf2d   :  { %4759 = vtanh.f32 %v2273_v22 }
 0xf2e   :  { %v4754_v23 = vpop.eup %4753 }
 0xf2f   :  { %v4756_v25 = vpop.eup %4755  ;;  %v2492_v11 = vmul.f32 %v4754_v23, %v5035_v30  ;;  %v5461_v23 = vld [vmem:[%s5626_s6] ss:$0 sm:$0xff] }
 0xf30   :  { %v2491_v34 = vmul.f32 %v4756_v25, %v5035_v30 }
 0xf31   :  { %v2494_v35 = vadd.f32 %v2492_v11, %v5041_v39 }
 0xf32   :  { %v2493_v16 = vadd.f32 %v2491_v34, %v5041_v39 }
 0xf33   :  { %v2496_v52 = vmul.f32 %v2494_v35, %v5351_v42  ;;  %v4509_v42 = vpack.c.bf16 %v2319_v5, %v2318_v2 }
 0xf34   :  { %v2495_v56 = vmul.f32 %v2493_v16, %v5353_v43 }
 0xf36   :  { %v4758_v26 = vpop.eup %4757 }
 0xf37   :  { %v4760_v27 = vpop.eup %4759  ;;  %v2278_v50 = vmul.f32 %v4758_v26, %v5035_v30 }
 0xf38   :  { %v2277_v10 = vmul.f32 %v4760_v27, %v5035_v30 }
 0xf39   :  { %v2280_v32 = vadd.f32 %v2278_v50, %v5041_v39 }
 0xf3a   :  { %v2279_v33 = vadd.f32 %v2277_v10, %v5041_v39 }
 0xf3b   :  { %2287 = vrot.lane.b32.xlu1 %v2280_v32, %s4864_s24  ;;  %v2282_v46 = vmul.f32 %v2280_v32, %v5343_v36 }
 0xf3c   :  { %2285 = vrot.lane.b32.xlu0 %v2279_v33, %s4864_s24  ;;  %v2281_v48 = vmul.f32 %v2279_v33, %v5345_v37  ;;  %v2316_v37 = vld [vmem:[#allocation3 + $0x80] sm:$0xff] }
 0xf3d   :  { %v4505_v3 = vpack.c.bf16 %v2317_v63, %v2316_v37 }
 0xf3f   :  { %2501 = vrot.lane.b32.xlu1 %v2494_v35, %s4864_s24  ;;  %4506 = vmatprep.subr.bf16.mxu1 %v4505_v3 }
 0xf40   :  { %2499 = vrot.lane.b32.xlu0 %v2493_v16, %s4864_s24  ;;  %4508 = vmatpush3.bf16.msra.mxu1 %v4505_v3 }
 0xf41   :  { %4510 = vmatprep.subr.bf16.mxu1 %v4509_v42 }
 0xf44   :  { %4512 = vmatpush3.bf16.msra.mxu1 %v4509_v42 }
 0xfad   :  { %v2288_v17 = vpop.permute.xlu1 %2287 }
 0xfae   :  { %v2292_v38 = vmul.f32 %v2288_v17, %v2280_v32  ;;  %v2286_v40 = vpop.permute.xlu0 %2285 }
 0xfaf   :  { %v2291_v41 = vmul.f32 %v2286_v40, %v2279_v33 }
 0xfb0   :  { %2297 = vrot.lane.b32.xlu1 %v2292_v38, %s4865_s25 }
 0xfb1   :  { %v2502_v1 = vpop.permute.xlu1 %2501  ;;  %2295 = vrot.lane.b32.xlu0 %v2291_v41, %s4865_s25 }
 0xfb2   :  { %v2506_v24 = vmul.f32 %v2502_v1, %v2494_v35  ;;  %v2500_v44 = vpop.permute.xlu0 %2499 }
 0xfb3   :  { %v2505_v45 = vmul.f32 %v2500_v44, %v2493_v16 }
 0xfb4   :  { %2511 = vrot.lane.b32.xlu1 %v2506_v24, %s4865_s25 }
 0xfb5   :  { %2509 = vrot.lane.b32.xlu0 %v2505_v45, %s4865_s25 }
0x1022   :  { %v2298_v47 = vpop.permute.xlu1 %2297 }
0x1023   :  { %v5416_v49 = vadd.f32 %v2298_v47, %v2282_v46  ;;  %v2296_v29 = vpop.permute.xlu0 %2295 }
0x1024   :  { %v5418_v31 = vadd.f32 %v2296_v29, %v2281_v48 }
0x1025   :  { %4761 = vtanh.f32 %v5416_v49 }
0x1026   :  { %4763 = vtanh.f32 %v5418_v31  ;;  %v2512_v54 = vpop.permute.xlu1 %2511 }
0x1027   :  { %v5424_v58 = vadd.f32 %v2512_v54, %v2496_v52  ;;  %v2510_v36 = vpop.permute.xlu0 %2509 }
0x1028   :  { %v5426_v61 = vadd.f32 %v2510_v36, %v2495_v56 }
0x1029   :  { %4765 = vtanh.f32 %v5424_v58 }
0x102a   :  { %4767 = vtanh.f32 %v5426_v61 }
0x102f   :  { %v4762_v6 = vpop.eup %4761 }
0x1030   :  { %v4764_v43 = vpop.eup %4763  ;;  %2309 = vrot.lane.b32.xlu1 %v4762_v6, %s4864_s24 }
0x1031   :  { %2307 = vrot.lane.b32.xlu0 %v4764_v43, %s4864_s24 }
0x1033   :  { %v4766_v0 = vpop.eup %4765 }
0x1034   :  { %v4768_v53 = vpop.eup %4767  ;;  %2523 = vrot.lane.b32.xlu1 %v4766_v0, %s4864_s24 }
0x1035   :  { %2521 = vrot.lane.b32.xlu0 %v4768_v53, %s4864_s24 }
0x10a2   :  { %v2310_v8 = vpop.permute.xlu1 %2309 }
0x10a3   :  { %v2314_v9 = vmul.f32 %v2310_v8, %v2280_v32  ;;  %v2308_v13 = vpop.permute.xlu0 %2307 }
0x10a4   :  { %v2313_v15 = vmul.f32 %v2308_v13, %v2279_v33 }
0x10a5   :  { %2324 = vrot.lane.b32.xlu1 %v2314_v9, %s4865_s25 }
0x10a6   :  { %v2524_v51 = vpop.permute.xlu1 %2523  ;;  %2322 = vrot.lane.b32.xlu0 %v2313_v15, %s4865_s25  ;;  %v2735_v15 = vld [vmem:[#allocation3 + $0xa8] sm:$0xff] }
0x10a7   :  { %v2528_v55 = vmul.f32 %v2524_v51, %v2494_v35  ;;  %v2522_v18 = vpop.permute.xlu0 %2521  ;;  %v2736_v51 = vld [vmem:[#allocation3 + $0xb0] sm:$0xff] }
0x10a8   :  { %v2527_v28 = vmul.f32 %v2522_v18, %v2493_v16 }
0x10a9   :  { %2608 = vrot.lane.b32.xlu1 %v2528_v55, %s4865_s25 }
0x10aa   :  { %2606 = vrot.lane.b32.xlu0 %v2527_v28, %s4865_s25  ;;  %v2737_v28 = vld [vmem:[#allocation3 + $0xb8] sm:$0xff] }
0x1117   :  { %v2325_v20 = vpop.permute.xlu1 %2324 }
0x1118   :  { %v2323_v19 = vpop.permute.xlu0 %2322 }
0x1119   :  { %4214 = vmatprep.mubr.msk.f32.mxu1 %vm317_vm4, %v2323_v19  ;;  %4236 = vmatprep.mubr.msk.f32.mxu0 %vm317_vm4, %v2323_v19 }
0x111a   :  { %4215 = vmatmul.mubr.msk.f32.vlgmr.msra.gmra.mrb[2].mxu1 %vm317_vm4, %v2325_v20  ;;  %4237 = vmatmul.mubr.msk.f32.vlgmr.msra.gmra.mrb[18].mxu0 %vm317_vm4, %v2325_v20 }
0x111b   :  { %4532 = vmatpush3.bf16.msra.mxu0 %v5082_v62  ;;  %v2609_v60 = vpop.permute.xlu1 %2608 }
0x111c   :  { %v2607_v21 = vpop.permute.xlu0 %2606  ;;  %4534 = vmatprep.subr.bf16.mxu0 %v5096_v4 }
0x111d   :  { %4247 = vmatprep.mubr.msk.f32.mxu0 %vm317_vm4, %v2607_v21 }
0x111f   :  { %4536 = vmatpush3.bf16.msra.mxu0 %v5096_v4 }
0x1120   :  { %4546 = vmatprep.subr.bf16.mxu0 %v4949_v7 }
0x1122   :  { %4248 = vmatmul.mubr.msk.f32.vlgmr.msra.gmra.mrb[18].mxu0 %vm317_vm4, %v2609_v60 }
0x1123   :  { %4548 = vmatpush3.bf16.msra.mxu0 %v4949_v7  ;;  %4269 = vmatprep.mubr.msk.f32.mxu0 %vm317_vm4, %v2607_v21 }
0x1124   :  { %4550 = vmatprep.subr.bf16.mxu0 %v4964_v12 }
0x1127   :  { %4552 = vmatpush3.bf16.msra.mxu0 %v4964_v12 }
0x1128   :  { %4578 = vmatprep.subr.bf16.mxu0 %v4949_v7 }
0x112a   :  { %4270 = vmatmul.mubr.msk.f32.vlgmr.msra.gmra.mrb[12].mxu0 %vm317_vm4, %v2609_v60 }
0x112b   :  { %4580 = vmatpush3.bf16.msra.mxu0 %v4949_v7 }
0x112c   :  { %4582 = vmatprep.subr.bf16.mxu0 %v4964_v12 }
0x112f   :  { %4584 = vmatpush3.bf16.msra.mxu0 %v4964_v12 }
0x1130   :  { %4586 = vmatprep.subr.bf16.mxu0 %v5066_v57 }
0x11f5   :  { %v4249_v22 = vpop.f32.mrb[18].mxu0 }
0x11f6   :  { %v2690_v25 = vadd.f32 %v5461_v23, %v4249_v22  ;;  %v2680_v26 = vpop.f32.mrb[19].mxu0 }
0x11f7   :  { %v2689_v27 = vadd.f32 %v5461_v23, %v2680_v26 }
0x11f8   :  { %v2692_v50 = vmul.f32 %v2690_v25, %v5035_v30 }
0x11f9   :  { %v2691_v7 = vmul.f32 %v2689_v27, %v5035_v30 }
0x11fa   :  { %4769 = vtanh.f32 %v2692_v50 }
0x11fb   :  { %4771 = vtanh.f32 %v2691_v7 }
0x11fd   :  { %v4271_v12 = vpop.f32.mrb[12].mxu0 }
0x11fe   :  { %v4621_v10 = vadd.f32 %v5388_v14, %v4271_v12  ;;  %v2894_v32 = vpop.f32.mrb[13].mxu0 }
0x11ff   :  { %v4622_v11 = vadd.f32 %v5388_v14, %v2894_v32 }
0x1200   :  { %v2906_v33 = vmul.f32 %v4621_v10, %v5035_v30 }
0x1201   :  { %v2905_v34 = vmul.f32 %v4622_v11, %v5035_v30 }
0x1202   :  { %4773 = vtanh.f32 %v2906_v33 }
0x1203   :  { %4775 = vtanh.f32 %v2905_v34 }
0x1204   :  { %v4770_v35 = vpop.eup %4769 }
0x1205   :  { %v4772_v16 = vpop.eup %4771  ;;  %v2696_v17 = vmul.f32 %v4770_v35, %v5035_v30 }
0x1206   :  { %v2695_v38 = vmul.f32 %v4772_v16, %v5035_v30 }
0x1207   :  { %v2698_v40 = vadd.f32 %v2696_v17, %v5041_v39 }
0x1208   :  { %v2697_v41 = vadd.f32 %v2695_v38, %v5041_v39 }
0x1209   :  { %2705 = vrot.lane.b32.xlu1 %v2698_v40, %s4864_s24  ;;  %v2700_v2 = vmul.f32 %v2698_v40, %v5416_v49 }
0x120a   :  { %2703 = vrot.lane.b32.xlu0 %v2697_v41, %s4864_s24  ;;  %v2699_v5 = vmul.f32 %v2697_v41, %v5418_v31  ;;  %v2734_v31 = vld [vmem:[#allocation3 + $0xa0] sm:$0xff] }
0x120b   :  { %v4537_v18 = vpack.c.bf16 %v2735_v15, %v2734_v31 }
0x120c   :  { %v4774_v1 = vpop.eup %4773 }
0x120d   :  { %v4776_v24 = vpop.eup %4775  ;;  %v2910_v44 = vmul.f32 %v4774_v1, %v5035_v30  ;;  %4538 = vmatprep.subr.bf16.mxu1 %v4537_v18 }
0x120e   :  { %v2909_v45 = vmul.f32 %v4776_v24, %v5035_v30  ;;  %4540 = vmatpush3.bf16.msra.mxu1 %v4537_v18 }
0x120f   :  { %v2912_v46 = vadd.f32 %v2910_v44, %v5041_v39 }
0x1210   :  { %v2911_v47 = vadd.f32 %v2909_v45, %v5041_v39 }
0x1211   :  { %2919 = vrot.lane.b32.xlu1 %v2912_v46, %s4864_s24  ;;  %v2914_v0 = vmul.f32 %v2912_v46, %v5424_v58  ;;  %v4541_v58 = vpack.c.bf16 %v2737_v28, %v2736_v51 }
0x1212   :  { %2917 = vrot.lane.b32.xlu0 %v2911_v47, %s4864_s24  ;;  %v2913_v8 = vmul.f32 %v2911_v47, %v5426_v61 }
0x1213   :  { %4542 = vmatprep.subr.bf16.mxu1 %v4541_v58 }
0x1214   :  { %4544 = vmatpush3.bf16.msra.mxu1 %v4541_v58 }
0x1215   :  { %4554 = vmatprep.subr.bf16.mxu1 %v5066_v57 }
0x127b   :  { %v2706_v48 = vpop.permute.xlu1 %2705 }
0x127c   :  { %v2710_v29 = vmul.f32 %v2706_v48, %v2698_v40  ;;  %v2704_v52 = vpop.permute.xlu0 %2703 }
0x127d   :  { %v2709_v54 = vmul.f32 %v2704_v52, %v2697_v41 }
0x127e   :  { %2715 = vrot.lane.b32.xlu1 %v2710_v29, %s4865_s25 }
0x127f   :  { %2713 = vrot.lane.b32.xlu0 %v2709_v54, %s4865_s25 }
0x1283   :  { %v2920_v56 = vpop.permute.xlu1 %2919 }
0x1284   :  { %v2924_v36 = vmul.f32 %v2920_v56, %v2912_v46  ;;  %v2918_v37 = vpop.permute.xlu0 %2917 }
0x1285   :  { %v2923_v63 = vmul.f32 %v2918_v37, %v2911_v47 }
0x1286   :  { %2929 = vrot.lane.b32.xlu1 %v2924_v36, %s4865_s25 }
0x1287   :  { %2927 = vrot.lane.b32.xlu0 %v2923_v63, %s4865_s25 }
0x12f0   :  { %v2716_v3 = vpop.permute.xlu1 %2715 }
0x12f1   :  { %v5489_v42 = vadd.f32 %v2716_v3, %v2700_v2  ;;  %v2714_v6 = vpop.permute.xlu0 %2713 }
0x12f2   :  { %v5491_v43 = vadd.f32 %v2714_v6, %v2699_v5 }
0x12f3   :  { %4777 = vtanh.f32 %v5489_v42 }
0x12f4   :  { %4779 = vtanh.f32 %v5491_v43 }
0x12f8   :  { %v2930_v53 = vpop.permute.xlu1 %2929 }
0x12f9   :  { %v5497_v9 = vadd.f32 %v2930_v53, %v2914_v0  ;;  %v2928_v49 = vpop.permute.xlu0 %2927 }
0x12fa   :  { %v5499_v13 = vadd.f32 %v2928_v49, %v2913_v8 }
0x12fb   :  { %4781 = vtanh.f32 %v5497_v9 }
0x12fc   :  { %4783 = vtanh.f32 %v5499_v13 }
0x12fd   :  { %v4778_v55 = vpop.eup %4777 }
0x12fe   :  { %v4780_v19 = vpop.eup %4779  ;;  %2727 = vrot.lane.b32.xlu1 %v4778_v55, %s4864_s24 }
0x12ff   :  { %2725 = vrot.lane.b32.xlu0 %v4780_v19, %s4864_s24 }
0x1305   :  { %v4782_v61 = vpop.eup %4781 }
0x1306   :  { %v4784_v20 = vpop.eup %4783  ;;  %2941 = vrot.lane.b32.xlu1 %v4782_v61, %s4864_s24 }
0x1307   :  { %2939 = vrot.lane.b32.xlu0 %v4784_v20, %s4864_s24 }
0x1370   :  { %v2728_v21 = vpop.permute.xlu1 %2727 }
0x1371   :  { %v2732_v60 = vmul.f32 %v2728_v21, %v2698_v40  ;;  %v2726_v22 = vpop.permute.xlu0 %2725  ;;  %v3153_v21 = vld [vmem:[#allocation3 + $0xc8] sm:$0xff] }
0x1372   :  { %v2731_v25 = vmul.f32 %v2726_v22, %v2697_v41 }
0x1373   :  { %2742 = vrot.lane.b32.xlu1 %v2732_v60, %s4865_s25  ;;  %v3154_v60 = vld [vmem:[#allocation3 + $0xd0] sm:$0xff] }
0x1374   :  { %2740 = vrot.lane.b32.xlu0 %v2731_v25, %s4865_s25  ;;  %v3155_v25 = vld [vmem:[#allocation3 + $0xd8] sm:$0xff] }
0x1378   :  { %v2942_v26 = vpop.permute.xlu1 %2941 }
0x1379   :  { %v2946_v27 = vmul.f32 %v2942_v26, %v2912_v46  ;;  %v2940_v50 = vpop.permute.xlu0 %2939  ;;  %v4573_v26 = vpack.c.bf16 %v3155_v25, %v3154_v60 }
0x137a   :  { %v2945_v7 = vmul.f32 %v2940_v50, %v2911_v47 }
0x137b   :  { %3026 = vrot.lane.b32.xlu1 %v2946_v27, %s4865_s25 }
0x137c   :  { %3024 = vrot.lane.b32.xlu0 %v2945_v7, %s4865_s25 }
0x13e5   :  { %v2743_v10 = vpop.permute.xlu1 %2742 }
0x13e6   :  { %v2741_v12 = vpop.permute.xlu0 %2740 }
0x13e7   :  { %4258 = vmatprep.mubr.msk.f32.mxu1 %vm317_vm4, %v2741_v12 }
0x13e8   :  { %4259 = vmatmul.mubr.msk.f32.vlgmr.msra.gmra.mrb[2].mxu1 %vm317_vm4, %v2743_v10 }
0x13e9   :  { %4556 = vmatpush3.bf16.msra.mxu1 %v5066_v57  ;;  %4280 = vmatprep.mubr.msk.f32.mxu1 %vm317_vm4, %v2741_v12 }
0x13ea   :  { %4558 = vmatprep.subr.bf16.mxu1 %v5071_v59 }
0x13ed   :  { %4560 = vmatpush3.bf16.msra.mxu1 %v5071_v59  ;;  %v3027_v11 = vpop.permute.xlu1 %3026 }
0x13ee   :  { %v3025_v32 = vpop.permute.xlu0 %3024  ;;  %4562 = vmatprep.subr.bf16.mxu1 %v5082_v62 }
0x13ef   :  { %4313 = vmatprep.mubr.msk.f32.mxu0 %vm317_vm4, %v3025_v32 }
0x13f0   :  { %4281 = vmatmul.mubr.msk.f32.vlgmr.msra.gmra.mrb[10].mxu1 %vm317_vm4, %v2743_v10  ;;  %4314 = vmatmul.mubr.msk.f32.vlgmr.msra.gmra.mrb[14].mxu0 %vm317_vm4, %v3027_v11 }
0x13f1   :  { %4564 = vmatpush3.bf16.msra.mxu1 %v5082_v62  ;;  %4291 = vmatprep.mubr.msk.f32.mxu1 %vm317_vm4, %v3025_v32 }
0x13f2   :  { %4566 = vmatprep.subr.bf16.mxu1 %v5096_v4  ;;  %4588 = vmatpush3.bf16.msra.mxu0 %v5066_v57 }
0x13f3   :  { %4590 = vmatprep.subr.bf16.mxu0 %v5071_v59 }
0x13f5   :  { %4568 = vmatpush3.bf16.msra.mxu1 %v5096_v4 }
0x13f6   :  { %4592 = vmatpush3.bf16.msra.mxu0 %v5071_v59 }
0x13f7   :  { %4594 = vmatprep.subr.bf16.mxu0 %v5082_v62 }
0x13f8   :  { %4292 = vmatmul.mubr.msk.f32.vlgmr.msra.gmra.mrb[10].mxu1 %vm317_vm4, %v3027_v11 }
0x14c3   :  { %v4315_v33 = vpop.f32.mrb[14].mxu0 }
0x14c4   :  { %v3312_v34 = vpop.f32.mrb[15].mxu0  ;;  %v4623_v35 = vadd.f32 %v5388_v14, %v4315_v33 }
0x14c5   :  { %v4624_v16 = vadd.f32 %v5388_v14, %v3312_v34 }
0x14c6   :  { %v3324_v17 = vmul.f32 %v4623_v35, %v5035_v30 }
0x14c7   :  { %v3323_v57 = vmul.f32 %v4624_v16, %v5035_v30 }
0x14c8   :  { %4785 = vtanh.f32 %v3324_v17 }
0x14c9   :  { %4787 = vtanh.f32 %v3323_v57 }
0x14cb   :  { %v4293_v38 = vpop.f32.mrb[10].mxu1 }
0x14cc   :  { %v3108_v40 = vadd.f32 %v5461_v23, %v4293_v38  ;;  %v3098_v41 = vpop.f32.mrb[11].mxu1 }
0x14cd   :  { %v3107_v59 = vadd.f32 %v5461_v23, %v3098_v41 }
0x14ce   :  { %v3110_v1 = vmul.f32 %v3108_v40, %v5035_v30 }
0x14cf   :  { %v3109_v24 = vmul.f32 %v3107_v59, %v5035_v30 }
0x14d0   :  { %4789 = vtanh.f32 %v3110_v1 }
0x14d1   :  { %4791 = vtanh.f32 %v3109_v24 }
0x14d2   :  { %v4786_v44 = vpop.eup %4785 }
0x14d3   :  { %v4788_v14 = vpop.eup %4787  ;;  %v3328_v52 = vmul.f32 %v4786_v44, %v5035_v30 }
0x14d4   :  { %v3327_v56 = vmul.f32 %v4788_v14, %v5035_v30 }
0x14d5   :  { %v3330_v36 = vadd.f32 %v3328_v52, %v5041_v39 }
0x14d6   :  { %v3329_v37 = vadd.f32 %v3327_v56, %v5041_v39 }
0x14d7   :  { %v3332_v28 = vmul.f32 %v3330_v36, %v5497_v9 }
0x14d8   :  { %v3331_v58 = vmul.f32 %v3329_v37, %v5499_v13 }
0x14da   :  { %v4790_v45 = vpop.eup %4789 }
0x14db   :  { %v4792_v46 = vpop.eup %4791  ;;  %v3114_v47 = vmul.f32 %v4790_v45, %v5035_v30 }
0x14dc   :  { %v3113_v48 = vmul.f32 %v4792_v46, %v5035_v30 }
0x14dd   :  { %v3116_v29 = vadd.f32 %v3114_v47, %v5041_v39 }
0x14de   :  { %v3115_v54 = vadd.f32 %v3113_v48, %v5041_v39 }
0x14df   :  { %3123 = vrot.lane.b32.xlu1 %v3116_v29, %s4864_s24  ;;  %v3118_v49 = vmul.f32 %v3116_v29, %v5489_v42 }
0x14e0   :  { %3121 = vrot.lane.b32.xlu0 %v3115_v54, %s4864_s24  ;;  %v3117_v15 = vmul.f32 %v3115_v54, %v5491_v43  ;;  %v3152_v43 = vld [vmem:[#allocation3 + $0xc0] sm:$0xff] }
0x14e1   :  { %v4569_v22 = vpack.c.bf16 %v3153_v21, %v3152_v43 }
0x14e3   :  { %3337 = vrot.lane.b32.xlu1 %v3330_v36, %s4864_s24  ;;  %4570 = vmatprep.subr.bf16.mxu1 %v4569_v22 }
0x14e4   :  { %3335 = vrot.lane.b32.xlu0 %v3329_v37, %s4864_s24  ;;  %4572 = vmatpush3.bf16.msra.mxu1 %v4569_v22 }
0x14e5   :  { %4574 = vmatprep.subr.bf16.mxu1 %v4573_v26 }
0x14e8   :  { %4576 = vmatpush3.bf16.msra.mxu1 %v4573_v26 }
0x1551   :  { %v3124_v63 = vpop.permute.xlu1 %3123 }
0x1552   :  { %v3128_v2 = vmul.f32 %v3124_v63, %v3116_v29  ;;  %v3122_v3 = vpop.permute.xlu0 %3121  ;;  %v3570_v63 = vld [vmem:[#allocation3 + $0xe0] sm:$0xff] }
0x1553   :  { %v3127_v5 = vmul.f32 %v3122_v3, %v3115_v54  ;;  %v3572_v3 = vld [vmem:[#allocation3 + $0xf0] sm:$0xff] }
0x1554   :  { %3133 = vrot.lane.b32.xlu1 %v3128_v2, %s4865_s25  ;;  %v3571_v2 = vld [vmem:[#allocation3 + $0xe8] sm:$0xff] }
0x1555   :  { %v3338_v6 = vpop.permute.xlu1 %3337  ;;  %3131 = vrot.lane.b32.xlu0 %v3127_v5, %s4865_s25  ;;  %v4601_v5 = vpack.c.bf16 %v3571_v2, %v3570_v63 }
0x1556   :  { %v3342_v0 = vmul.f32 %v3338_v6, %v3330_v36  ;;  %v3336_v53 = vpop.permute.xlu0 %3335  ;;  %v3573_v6 = vld [vmem:[#allocation3 + $0xf8] sm:$0xff] }
0x1557   :  { %v3341_v8 = vmul.f32 %v3336_v53, %v3329_v37  ;;  %4602 = vmatprep.subr.bf16.mxu1 %v4601_v5 }
0x1558   :  { %3347 = vrot.lane.b32.xlu1 %v3342_v0, %s4865_s25  ;;  %v4605_v0 = vpack.c.bf16 %v3573_v6, %v3572_v3 }
0x1559   :  { %3345 = vrot.lane.b32.xlu0 %v3341_v8, %s4865_s25 }
0x15c6   :  { %v3134_v31 = vpop.permute.xlu1 %3133 }
0x15c7   :  { %v5557_v51 = vadd.f32 %v3134_v31, %v3118_v49  ;;  %v3132_v55 = vpop.permute.xlu0 %3131 }
0x15c8   :  { %v5559_v18 = vadd.f32 %v3132_v55, %v3117_v15 }
0x15c9   :  { %4793 = vtanh.f32 %v5557_v51 }
0x15ca   :  { %4795 = vtanh.f32 %v5559_v18  ;;  %v3348_v19 = vpop.permute.xlu1 %3347 }
0x15cb   :  { %v3352_v61 = vadd.f32 %v3348_v19, %v3332_v28  ;;  %v3346_v20 = vpop.permute.xlu0 %3345  ;;  %v3698_v28 = vld [vmem:[%s5628_s8] ss:$0 sm:$0xff] }
0x15cc   :  { %v3351_v42 = vadd.f32 %v3346_v20, %v3331_v58 }
0x15cd   :  { %4797 = vtanh.f32 %v3352_v61 }
0x15ce   :  { %4799 = vtanh.f32 %v3351_v42 }
0x15d3   :  { %v4794_v27 = vpop.eup %4793 }
0x15d4   :  { %v4796_v9 = vpop.eup %4795  ;;  %3145 = vrot.lane.b32.xlu1 %v4794_v27, %s4864_s24 }
0x15d5   :  { %3143 = vrot.lane.b32.xlu0 %v4796_v9, %s4864_s24 }
0x15d7   :  { %v4798_v13 = vpop.eup %4797 }
0x15d8   :  { %v4800_v50 = vpop.eup %4799  ;;  %3359 = vrot.lane.b32.xlu1 %v4798_v13, %s4864_s24 }
0x15d9   :  { %3357 = vrot.lane.b32.xlu0 %v4800_v50, %s4864_s24 }
0x1646   :  { %v3146_v7 = vpop.permute.xlu1 %3145 }
0x1647   :  { %v3150_v12 = vmul.f32 %v3146_v7, %v3116_v29  ;;  %v3144_v10 = vpop.permute.xlu0 %3143 }
0x1648   :  { %v3149_v32 = vmul.f32 %v3144_v10, %v3115_v54 }
0x1649   :  { %3160 = vrot.lane.b32.xlu1 %v3150_v12, %s4865_s25 }
0x164a   :  { %v3360_v11 = vpop.permute.xlu1 %3359  ;;  %3158 = vrot.lane.b32.xlu0 %v3149_v32, %s4865_s25 }
0x164b   :  { %v3364_v33 = vmul.f32 %v3360_v11, %v3330_v36  ;;  %v3358_v34 = vpop.permute.xlu0 %3357 }
0x164c   :  { %v3363_v35 = vmul.f32 %v3358_v34, %v3329_v37 }
0x164d   :  { %3444 = vrot.lane.b32.xlu1 %v3364_v33, %s4865_s25 }
0x164e   :  { %3442 = vrot.lane.b32.xlu0 %v3363_v35, %s4865_s25 }
0x16bb   :  { %v3161_v17 = vpop.permute.xlu1 %3160 }
0x16bc   :  { %v3159_v16 = vpop.permute.xlu0 %3158 }
0x16bd   :  { %4302 = vmatprep.mubr.msk.f32.mxu1 %vm317_vm4, %v3159_v16  ;;  %4324 = vmatprep.mubr.msk.f32.mxu0 %vm317_vm4, %v3159_v16 }
0x16be   :  { %4303 = vmatmul.mubr.msk.f32.vlgmr.msra.gmra.mrb[2].mxu1 %vm317_vm4, %v3161_v17  ;;  %4325 = vmatmul.mubr.msk.f32.vlgmr.msra.gmra.mrb[20].mxu0 %vm317_vm4, %v3161_v17 }
0x16bf   :  { %4596 = vmatpush3.bf16.msra.mxu0 %v5082_v62  ;;  %v3445_v38 = vpop.permute.xlu1 %3444  ;;  %4604 = vmatpush3.bf16.msra.mxu1 %v4601_v5 }
0x16c0   :  { %v3443_v57 = vpop.permute.xlu0 %3442  ;;  %4598 = vmatprep.subr.bf16.mxu0 %v5096_v4  ;;  %4606 = vmatprep.subr.bf16.mxu1 %v4605_v0 }
0x16c1   :  { %4335 = vmatprep.mubr.msk.f32.mxu0 %vm317_vm4, %v3443_v57 }
0x16c3   :  { %4600 = vmatpush3.bf16.msra.mxu0 %v5096_v4  ;;  %4608 = vmatpush3.bf16.msra.mxu1 %v4605_v0 }
0x16c6   :  { %4336 = vmatmul.mubr.msk.f32.vlgmr.msra.gmra.mrb[20].mxu0 %vm317_vm4, %v3445_v38 }
0x1799   :  { %v4337_v40 = vpop.f32.mrb[20].mxu0 }
0x179a   :  { %v3526_v41 = vadd.f32 %v5461_v23, %v4337_v40  ;;  %v3516_v59 = vpop.f32.mrb[21].mxu0 }
0x179b   :  { %v3525_v1 = vadd.f32 %v5461_v23, %v3516_v59 }
0x179c   :  { %v3528_v24 = vmul.f32 %v3526_v41, %v5035_v30 }
0x179d   :  { %v3527_v62 = vmul.f32 %v3525_v1, %v5035_v30 }
0x179e   :  { %4801 = vtanh.f32 %v3528_v24 }
0x179f   :  { %4803 = vtanh.f32 %v3527_v62 }
0x17a8   :  { %v4802_v44 = vpop.eup %4801 }
0x17a9   :  { %v4804_v14 = vpop.eup %4803  ;;  %v3532_v45 = vmul.f32 %v4802_v44, %v5035_v30 }
0x17aa   :  { %v3531_v4 = vmul.f32 %v4804_v14, %v5035_v30 }
0x17ab   :  { %v3534_v46 = vadd.f32 %v3532_v45, %v5041_v39 }
0x17ac   :  { %v3533_v47 = vadd.f32 %v3531_v4, %v5041_v39 }
0x17ad   :  { %3541 = vrot.lane.b32.xlu1 %v3534_v46, %s4864_s24  ;;  %v3536_v54 = vmul.f32 %v3534_v46, %v5557_v51 }
0x17ae   :  { %3539 = vrot.lane.b32.xlu0 %v3533_v47, %s4864_s24  ;;  %v3535_v30 = vmul.f32 %v3533_v47, %v5559_v18 }
0x181f   :  { %v3542_v23 = vpop.permute.xlu1 %3541 }
0x1820   :  { %v3546_v48 = vmul.f32 %v3542_v23, %v3534_v46  ;;  %v3540_v29 = vpop.permute.xlu0 %3539 }
0x1821   :  { %v3545_v52 = vmul.f32 %v3540_v29, %v3533_v47 }
0x1822   :  { %3551 = vrot.lane.b32.xlu1 %v3546_v48, %s4865_s25 }
0x1823   :  { %3549 = vrot.lane.b32.xlu0 %v3545_v52, %s4865_s25 }
0x1894   :  { %v3552_v56 = vpop.permute.xlu1 %3551 }
0x1895   :  { %v3556_v36 = vadd.f32 %v3552_v56, %v3536_v54  ;;  %v3550_v37 = vpop.permute.xlu0 %3549 }
0x1896   :  { %v3555_v39 = vadd.f32 %v3550_v37, %v3535_v30 }
0x1897   :  { %4805 = vtanh.f32 %v3556_v36 }
0x1898   :  { %4807 = vtanh.f32 %v3555_v39 }
0x18a1   :  { %v4806_v53 = vpop.eup %4805 }
0x18a2   :  { %v4808_v8 = vpop.eup %4807  ;;  %3563 = vrot.lane.b32.xlu1 %v4806_v53, %s4864_s24 }
0x18a3   :  { %3561 = vrot.lane.b32.xlu0 %v4808_v8, %s4864_s24  ;;  %s3668_s24 = sshll.u32 %s4866_s2, 4  ;;  %s3669_s24 = int_to_ptr.vmem [resolvable:$true] %s3668_s24 }
0x18a4   :  { %p4838_p9 = scmp.lt.s32.totalorder %s3669_s24, %s3669_s24 }
0x1914   :  { %v3564_v49 = vpop.permute.xlu1 %3563 }
0x1915   :  { %v3568_v31 = vmul.f32 %v3564_v49, %v3534_v46  ;;  %v3562_v15 = vpop.permute.xlu0 %3561 }
0x1916   :  { %v3567_v51 = vmul.f32 %v3562_v15, %v3533_v47 }
0x1917   :  { %3578 = vrot.lane.b32.xlu1 %v3568_v31, %s4865_s25 }
0x1918   :  { %3576 = vrot.lane.b32.xlu0 %v3567_v51, %s4865_s25  ;;  %s4833_s25 = scalar_lea.vmem %s3669_s24, 256 }
0x1919   :  { %p4834_p8 = scmp.ne.s32.totalorder %s3669_s24, %s4833_s25  ;;  %p4839_p10 = scmp.lt.s32.totalorder %s4833_s25, %s4833_s25 }
0x191b   :  { %p4840_p11 = por %p4839_p10, %p4838_p9 }
0x191d   :  { %p4841_p12 = pnand %p4840_p11, %p4834_p8 }
0x1989   :  { %v3579_v18 = vpop.permute.xlu1 %3578 }
0x198a   :  { %v3577_v55 = vpop.permute.xlu0 %3576 }
0x198b   :  { %4346 = vmatprep.mubr.msk.f32.mxu1 %vm317_vm4, %v3577_v55 }
0x198c   :  { %4347 = vmatmul.mubr.msk.f32.vlgmr.msra.gmra.mrb[2].mxu1 %vm317_vm4, %v3579_v18 }
0x1a5f   :  { %v4348_v19 = vpop.f32.mrb[2].mxu1 }
0x1a60   :  { %v4625_v58 = vadd.f32 %v4348_v19, %v3698_v28  ;;  %v3650_v61 = vpop.f32.mrb[3].mxu1 }
0x1a61   :  { %v4626_v20 = vadd.f32 %v3698_v28, %v3650_v61 }
0x1a62   :  { %3662 = vst [vmem:[#allocation6 + $0x8] sm:$0xff] %v4625_v58 }
0x1a63   :  { %3661 = vst [vmem:[#allocation6] sm:$0xff] %v4626_v20 }
0x1a64   :  { %4844 = shalt.err (!%p4841_p12)
}
0x1a65   :  { %s4845_s8 = scalar_lea.hbm %s5629_s9, 256 }
0x1a66   :  { %p4846_p13 = scmp.ne.s32.totalorder %s5629_s9, %s4845_s8  ;;  %p4849_p0 = scmp.lt.u32.totalorder %s4845_s8, %s5629_s9 }
0x1a68   :  { %p4851_p1 = pnand %p4849_p0, %p4846_p13 }
0x1a6a   :  { %4854 = shalt.err (!%p4851_p1)
}
0x1a6b   :  { %3674 = dma.vmem_to_hbm [thread:$0]  %s3669_s24, 256, %s5629_s9, [#allocation5], %s4860_s19, %s4860_s19, %s4861_s20  }
0x1a6c   :  { %4857 = dma.done.wait [#allocation5], 256  }
0x1a6d   :  { %4858 = vsyncadd [#allocation5], 4294967040 }
0x1a6e   :  { %3678 = vsyncpa [#allocation4], 1 }
0x1a6f   :  { %3679 = vsyncpa [#allocation5], 1 }

</bundles_post_ra>
